<compile_context>
chip_gen: v7x
topology: tpu7x:2x2x1
jax: 0.10.0
libtpu: 0.0.40
codegen_flags: <defaults>
</compile_context>

<pallas_src>
import functools

import jax
import jax.numpy as jnp
from jax.experimental import pallas as pl
from jax.experimental.pallas import tpu as pltpu


def _attention_kernel(nodes_ref, neighs_ref, w1n_ref, w1d_ref, b1_ref,
                      w2_ref, b2_ref, w3_ref, out_ref,
                      *, block_b, num_neighs, embed_dim):
    f32 = jnp.float32
    bf16 = jnp.bfloat16
    bt, n, e = block_b, num_neighs, embed_dim

    # ---- node branch: one (bt,E)@(E,E) matmul per block (bias folded in),
    #      reused by every neighbor of that node.  bf16 MXU, f32 accumulate.
    node_c = jnp.dot(nodes_ref[...].astype(bf16), w1d_ref[...],
                     preferred_element_type=f32) + b1_ref[...]          # (bt, E) f32

    w3 = w3_ref[...]                                                    # (1, E) f32
    lane = jax.lax.broadcasted_iota(jnp.int32, (bt, n), 1)
    logits = jnp.zeros((bt, n), f32)

    # ---- statically unrolled neighbor loop: all ops stay (bt, E); no reshapes,
    #      no selection matmuls, no quadratic masks.
    for j in range(n):
        xj = neighs_ref[:, pl.ds(j * e, e)].astype(bf16)                # in-kernel bf16 cast
        h1 = jnp.maximum(
            jnp.dot(xj, w1n_ref[...], preferred_element_type=f32) + node_c, 0.0)
        # dropout = identity (eval mode)
        h2 = jnp.maximum(
            jnp.dot(h1.astype(bf16), w2_ref[...],
                    preferred_element_type=f32) + b2_ref[...], 0.0)     # (bt, E) f32
        # att3: width-1 output -> VPU multiply + lane reduce (MXU stays free).
        # b3 is a constant shift of the logits and cancels in softmax: dropped.
        lj = jnp.sum(h2 * w3, axis=-1, keepdims=True)                   # (bt, 1) f32
        logits = logits + jnp.where(lane == j, lj, 0.0)                 # place in lane j

    # ---- per-node softmax over neighbors (lane direction); EUP approx recip.
    m = jnp.max(logits, axis=-1, keepdims=True)
    ex = jnp.exp(logits - m)
    denom = jnp.sum(ex, axis=-1, keepdims=True)
    out_ref[...] = ex * pl.reciprocal(denom, approx=True)


def _pick_block_b(batch, target=512):
    """Nodes per grid step.

    Prefer (a) dividing the batch, (b) sublane-friendly heights (multiple of 8
    unless the whole batch is taken), (c) an even number of grid steps (v7x has
    2 TensorCores), (d) as many nodes as possible up to `target` so each step
    carries thousands of packed rows and the ~0.35us/step fixed cost vanishes.
    """
    cands = [bt for bt in range(1, min(batch, target) + 1)
             if batch % bt == 0 and (bt % 8 == 0 or bt == batch)]
    if not cands:
        return batch
    even = [bt for bt in cands if (batch // bt) % 2 == 0]
    return max(even) if even else max(cands)


def attention_forward_batched(nodes, neighs, params):
    """nodes: (B, E) f32, neighs: (B, N, E) f32 -> (B, N) f32 per-node softmax."""
    b, n, e = neighs.shape
    assert nodes.shape == (b, e)
    bt = _pick_block_b(b)
    cd = jnp.bfloat16

    # Lane-dense neighbor view: free contiguous reshape, stays f32 in HBM
    # (the bf16 cast happens inside the kernel on the VPU).
    neighs2d = neighs.reshape(b, n * e)
    # Weights are tiny and MXU-facing -> bf16 (halves their per-step stream).
    w1n = params["w1n"].astype(cd)
    w1d = params["w1d"].astype(cd)
    w2 = params["w2"].astype(cd)
    b1, b2, w3 = params["b1"], params["b2"], params["w3"]     # f32 (VPU path)

    # Explicit VMEM budget: 2x (double-buffering) per streamed block + weights.
    blk_bytes = (bt * e + bt * n * e + bt * n) * 4
    vmem_limit = int(min(max(4 * blk_bytes + (1 << 20), 32 * 2**20), 60 * 2**20))

    kernel = functools.partial(_attention_kernel, block_b=bt, num_neighs=n,
                               embed_dim=e)
    full = lambda i: (0, 0)
    return pl.pallas_call(
        kernel,
        out_shape=jax.ShapeDtypeStruct((b, n), jnp.float32),
        grid=(b // bt,),
        in_specs=[
            pl.BlockSpec((bt, e), lambda i: (i, 0)),        # nodes block (f32)
            pl.BlockSpec((bt, n * e), lambda i: (i, 0)),    # neighbors block (f32, lane-dense)
            pl.BlockSpec((e, e), full),                     # w1n (bf16)
            pl.BlockSpec((e, e), full),                     # w1d (bf16)
            pl.BlockSpec((1, e), full),                     # b1  (f32)
            pl.BlockSpec((e, e), full),                     # w2  (bf16)
            pl.BlockSpec((1, e), full),                     # b2  (f32)
            pl.BlockSpec((1, e), full),                     # w3  (f32, VPU only)
        ],
        out_specs=pl.BlockSpec((bt, n), lambda i: (i, 0)),
        compiler_params=pltpu.CompilerParams(
            dimension_semantics=("parallel",),              # v7x: split blocks over both TCs
            vmem_limit_bytes=vmem_limit),
    )(nodes, neighs2d, w1n, w1d, b1, w2, b2, w3)


def attention_forward(node, neighs, params):
    """Original module signature: node (1, E), neighs (N, E) -> (N, 1)."""
    att = attention_forward_batched(node, neighs[None], params)   # (1, N) lane-dense
    return att.T


def init_params(key, embed_dim):
    """Deterministic init. Weights stored pre-transposed (in, out): kernel does x @ W."""
    e = embed_dim
    ks = jax.random.split(key, 6)
    s1 = 1.0 / jnp.sqrt(2.0 * e)
    s2 = 1.0 / jnp.sqrt(1.0 * e)
    w1_t = jax.random.uniform(ks[0], (2 * e, e), jnp.float32, -s1, s1)
    b1 = jax.random.uniform(ks[1], (1, e), jnp.float32, -s1, s1)
    w2_t = jax.random.uniform(ks[2], (e, e), jnp.float32, -s2, s2)
    b2 = jax.random.uniform(ks[3], (1, e), jnp.float32, -s2, s2)
    w3_row = jax.random.uniform(ks[4], (1, e), jnp.float32, -s2, s2)
    b3 = jax.random.uniform(ks[5], (1, 1), jnp.float32, -s2, s2)
    return {"w1n": w1_t[:e], "w1d": w1_t[e:], "b1": b1,
            "w2": w2_t, "b2": b2, "w3": w3_row, "b3": b3}


def attention_ref_f32(node, neighs, params):
    """Pure-JAX f32 mirror of the PyTorch forward (eval mode) for a single node."""
    n = neighs.shape[0]
    x = jnp.concatenate([neighs, jnp.tile(node, (n, 1))], axis=1)
    w1 = jnp.concatenate([params["w1n"], params["w1d"]], axis=0)
    x = jax.nn.relu(x @ w1 + params["b1"])
    x = jax.nn.relu(x @ params["w2"] + params["b2"])
    x = x @ params["w3"].T + params["b3"]
    return jax.nn.softmax(x, axis=0)          # (N, 1)


def attention_ref_bf16(nodes, neighs, params):
    """Batched reference mirroring the kernel's bf16-MXU / f32-accumulate math."""
    b, n, e = neighs.shape
    cd = jnp.bfloat16
    w1n, w1d, w2 = (params["w1n"].astype(cd), params["w1d"].astype(cd),
                    params["w2"].astype(cd))
    node_c = jnp.dot(nodes.astype(cd), w1d,
                     preferred_element_type=jnp.float32) + params["b1"]
    x = neighs.astype(cd).reshape(b * n, e)
    h1 = jax.nn.relu(jnp.dot(x, w1n, preferred_element_type=jnp.float32)
                     + jnp.repeat(node_c, n, axis=0))
    h2 = jax.nn.relu(jnp.dot(h1.astype(cd), w2,
                             preferred_element_type=jnp.float32) + params["b2"])
    logits = jnp.sum(h2 * params["w3"], axis=-1).reshape(b, n)
    return jax.nn.softmax(logits, axis=-1)    # (B, N)


if __name__ == "__main__":
    embed_dim = 32
    num_neighs = 8
    batch = 64            # small demo batch -> block_b=32, grid=(2,) ("parallel")

    key = jax.random.PRNGKey(0)
    k_nodes, k_neighs, k_params = jax.random.split(key, 3)
    nodes = jax.random.normal(k_nodes, (batch, embed_dim), jnp.float32)
    neighs = jax.random.normal(k_neighs, (batch, num_neighs, embed_dim), jnp.float32)
    params = init_params(k_params, embed_dim)

    # Batched path (the fast path): one kernel launch for all nodes.
    att = attention_forward_batched(nodes, neighs, params)
    jax.block_until_ready(att)

    ref16 = attention_ref_bf16(nodes, neighs, params)
    ref32 = jax.vmap(lambda nd, ng: attention_ref_f32(nd[None], ng, params)[:, 0])(
        nodes, neighs)
    assert att.shape == (batch, num_neighs)
    assert jnp.allclose(jnp.sum(att, axis=-1), 1.0, atol=2e-2)
    assert jnp.allclose(att, ref16, atol=2e-2)
    assert jnp.allclose(att, ref32, atol=6e-2)

    # Module-signature path: one node, (num_neighs, 1) output, vs f32 reference.
    att1 = attention_forward(nodes[:1], neighs[0], params)
    jax.block_until_ready(att1)
    ref1 = attention_ref_f32(nodes[:1], neighs[0], params)
    assert att1.shape == (num_neighs, 1)
    assert jnp.allclose(att1, ref1, atol=6e-2)

    print("KERNEL_OK")
</pallas_src>

<mosaic_0001>
module attributes {stable_mosaic.version = 11 : i64} {
  func.func @_attention_kernel(%arg0: i32, %arg1: memref<32x32xf32, #tpu.memory_space<vmem>>, %arg2: memref<32x256xf32, #tpu.memory_space<vmem>>, %arg3: memref<32x32xbf16, #tpu.memory_space<vmem>>, %arg4: memref<32x32xbf16, #tpu.memory_space<vmem>>, %arg5: memref<1x32xf32, #tpu.memory_space<vmem>>, %arg6: memref<32x32xbf16, #tpu.memory_space<vmem>>, %arg7: memref<1x32xf32, #tpu.memory_space<vmem>>, %arg8: memref<1x32xf32, #tpu.memory_space<vmem>>, %arg9: memref<32x8xf32, #tpu.memory_space<vmem>>) attributes {dimension_semantics = [#tpu.dimension_semantics<parallel>], iteration_bounds = array<i64: 2>, scalar_prefetch = 0 : i64, scratch_operands = 0 : i64, tpu.core_type = #tpu.core_type<tc>, window_params = [{transform_indices = @transform_0, window_bounds = array<i64: 32, 32>}, {transform_indices = @transform_1, window_bounds = array<i64: 32, 256>}, {pipeline_mode = #tpu.pipeline_mode<synchronous>, transform_indices = @transform_2, window_bounds = array<i64: 32, 32>}, {pipeline_mode = #tpu.pipeline_mode<synchronous>, transform_indices = @transform_3, window_bounds = array<i64: 32, 32>}, {pipeline_mode = #tpu.pipeline_mode<synchronous>, transform_indices = @transform_4, window_bounds = array<i64: 1, 32>}, {pipeline_mode = #tpu.pipeline_mode<synchronous>, transform_indices = @transform_5, window_bounds = array<i64: 32, 32>}, {pipeline_mode = #tpu.pipeline_mode<synchronous>, transform_indices = @transform_6, window_bounds = array<i64: 1, 32>}, {pipeline_mode = #tpu.pipeline_mode<synchronous>, transform_indices = @transform_7, window_bounds = array<i64: 1, 32>}, {transform_indices = @transform_8, window_bounds = array<i64: 32, 8>}]} {
    %c0 = arith.constant 0 : index
    %c0_0 = arith.constant 0 : index
    %0 = vector.load %arg1[%c0, %c0_0] : memref<32x32xf32, #tpu.memory_space<vmem>>, vector<32x32xf32>
    %1 = arith.truncf %0 : vector<32x32xf32> to vector<32x32xbf16>
    %c0_1 = arith.constant 0 : index
    %c0_2 = arith.constant 0 : index
    %2 = vector.load %arg4[%c0_1, %c0_2] : memref<32x32xbf16, #tpu.memory_space<vmem>>, vector<32x32xbf16>
    %cst = arith.constant dense<0.000000e+00> : vector<32x32xf32>
    %3 = tpu.matmul %1, %2, %cst {dimension_numbers = #tpu.dot_dimension_numbers<[1], [0], [0], [1], [0, 0, 1, 1], [], []>} : vector<32x32xbf16>, vector<32x32xbf16>, vector<32x32xf32> -> vector<32x32xf32>
    %c0_3 = arith.constant 0 : index
    %c0_4 = arith.constant 0 : index
    %4 = vector.load %arg5[%c0_3, %c0_4] : memref<1x32xf32, #tpu.memory_space<vmem>>, vector<1x32xf32>
    %5 = vector.broadcast %4 : vector<1x32xf32> to vector<32x32xf32>
    %6 = arith.addf %3, %5 : vector<32x32xf32>
    %c0_5 = arith.constant 0 : index
    %c0_6 = arith.constant 0 : index
    %7 = vector.load %arg8[%c0_5, %c0_6] : memref<1x32xf32, #tpu.memory_space<vmem>>, vector<1x32xf32>
    %8 = tpu.iota {dimensions = array<i32: 1>} : vector<32x8xi32>
    %cst_7 = arith.constant 0.000000e+00 : f32
    %9 = vector.broadcast %cst_7 : f32 to vector<32x8xf32>
    %c0_8 = arith.constant 0 : index
    %c0_9 = arith.constant 0 : index
    %10 = vector.load %arg2[%c0_8, %c0_9] : memref<32x256xf32, #tpu.memory_space<vmem>>, vector<32x32xf32>
    %11 = arith.truncf %10 : vector<32x32xf32> to vector<32x32xbf16>
    %c0_10 = arith.constant 0 : index
    %c0_11 = arith.constant 0 : index
    %12 = vector.load %arg3[%c0_10, %c0_11] : memref<32x32xbf16, #tpu.memory_space<vmem>>, vector<32x32xbf16>
    %cst_12 = arith.constant dense<0.000000e+00> : vector<32x32xf32>
    %13 = tpu.matmul %11, %12, %cst_12 {dimension_numbers = #tpu.dot_dimension_numbers<[1], [0], [0], [1], [0, 0, 1, 1], [], []>} : vector<32x32xbf16>, vector<32x32xbf16>, vector<32x32xf32> -> vector<32x32xf32>
    %14 = arith.addf %13, %6 : vector<32x32xf32>
    %cst_13 = arith.constant 0.000000e+00 : f32
    %15 = vector.broadcast %cst_13 : f32 to vector<32x32xf32>
    %16 = arith.maximumf %14, %15 : vector<32x32xf32>
    %17 = arith.truncf %16 : vector<32x32xf32> to vector<32x32xbf16>
    %c0_14 = arith.constant 0 : index
    %c0_15 = arith.constant 0 : index
    %18 = vector.load %arg6[%c0_14, %c0_15] : memref<32x32xbf16, #tpu.memory_space<vmem>>, vector<32x32xbf16>
    %cst_16 = arith.constant dense<0.000000e+00> : vector<32x32xf32>
    %19 = tpu.matmul %17, %18, %cst_16 {dimension_numbers = #tpu.dot_dimension_numbers<[1], [0], [0], [1], [0, 0, 1, 1], [], []>} : vector<32x32xbf16>, vector<32x32xbf16>, vector<32x32xf32> -> vector<32x32xf32>
    %c0_17 = arith.constant 0 : index
    %c0_18 = arith.constant 0 : index
    %20 = vector.load %arg7[%c0_17, %c0_18] : memref<1x32xf32, #tpu.memory_space<vmem>>, vector<1x32xf32>
    %21 = vector.broadcast %20 : vector<1x32xf32> to vector<32x32xf32>
    %22 = arith.addf %19, %21 : vector<32x32xf32>
    %cst_19 = arith.constant 0.000000e+00 : f32
    %23 = vector.broadcast %cst_19 : f32 to vector<32x32xf32>
    %24 = arith.maximumf %22, %23 : vector<32x32xf32>
    %25 = vector.broadcast %7 : vector<1x32xf32> to vector<32x32xf32>
    %26 = arith.mulf %24, %25 : vector<32x32xf32>
    %cst_20 = arith.constant dense<0.000000e+00> : vector<32xf32>
    %27 = vector.multi_reduction <add>, %26, %cst_20 [1] : vector<32x32xf32> to vector<32xf32>
    %28 = vector.shape_cast %27 : vector<32xf32> to vector<32x1xf32>
    %c0_i32 = arith.constant 0 : i32
    %29 = vector.broadcast %c0_i32 : i32 to vector<32x8xi32>
    %30 = arith.cmpi eq, %8, %29 : vector<32x8xi32>
    %cst_21 = arith.constant 0.000000e+00 : f32
    %31 = vector.shape_cast %28 : vector<32x1xf32> to vector<32x1xf32>
    %32 = vector.broadcast %31 : vector<32x1xf32> to vector<32x8xf32>
    %33 = vector.broadcast %cst_21 : f32 to vector<32x8xf32>
    %34 = arith.select %30, %32, %33 : vector<32x8xi1>, vector<32x8xf32>
    %35 = arith.addf %9, %34 : vector<32x8xf32>
    %c0_22 = arith.constant 0 : index
    %c32 = arith.constant 32 : index
    %36 = vector.load %arg2[%c0_22, %c32] : memref<32x256xf32, #tpu.memory_space<vmem>>, vector<32x32xf32>
    %37 = arith.truncf %36 : vector<32x32xf32> to vector<32x32xbf16>
    %c0_23 = arith.constant 0 : index
    %c0_24 = arith.constant 0 : index
    %38 = vector.load %arg3[%c0_23, %c0_24] : memref<32x32xbf16, #tpu.memory_space<vmem>>, vector<32x32xbf16>
    %cst_25 = arith.constant dense<0.000000e+00> : vector<32x32xf32>
    %39 = tpu.matmul %37, %38, %cst_25 {dimension_numbers = #tpu.dot_dimension_numbers<[1], [0], [0], [1], [0, 0, 1, 1], [], []>} : vector<32x32xbf16>, vector<32x32xbf16>, vector<32x32xf32> -> vector<32x32xf32>
    %40 = arith.addf %39, %6 : vector<32x32xf32>
    %cst_26 = arith.constant 0.000000e+00 : f32
    %41 = vector.broadcast %cst_26 : f32 to vector<32x32xf32>
    %42 = arith.maximumf %40, %41 : vector<32x32xf32>
    %43 = arith.truncf %42 : vector<32x32xf32> to vector<32x32xbf16>
    %c0_27 = arith.constant 0 : index
    %c0_28 = arith.constant 0 : index
    %44 = vector.load %arg6[%c0_27, %c0_28] : memref<32x32xbf16, #tpu.memory_space<vmem>>, vector<32x32xbf16>
    %cst_29 = arith.constant dense<0.000000e+00> : vector<32x32xf32>
    %45 = tpu.matmul %43, %44, %cst_29 {dimension_numbers = #tpu.dot_dimension_numbers<[1], [0], [0], [1], [0, 0, 1, 1], [], []>} : vector<32x32xbf16>, vector<32x32xbf16>, vector<32x32xf32> -> vector<32x32xf32>
    %c0_30 = arith.constant 0 : index
    %c0_31 = arith.constant 0 : index
    %46 = vector.load %arg7[%c0_30, %c0_31] : memref<1x32xf32, #tpu.memory_space<vmem>>, vector<1x32xf32>
    %47 = vector.broadcast %46 : vector<1x32xf32> to vector<32x32xf32>
    %48 = arith.addf %45, %47 : vector<32x32xf32>
    %cst_32 = arith.constant 0.000000e+00 : f32
    %49 = vector.broadcast %cst_32 : f32 to vector<32x32xf32>
    %50 = arith.maximumf %48, %49 : vector<32x32xf32>
    %51 = vector.broadcast %7 : vector<1x32xf32> to vector<32x32xf32>
    %52 = arith.mulf %50, %51 : vector<32x32xf32>
    %cst_33 = arith.constant dense<0.000000e+00> : vector<32xf32>
    %53 = vector.multi_reduction <add>, %52, %cst_33 [1] : vector<32x32xf32> to vector<32xf32>
    %54 = vector.shape_cast %53 : vector<32xf32> to vector<32x1xf32>
    %c1_i32 = arith.constant 1 : i32
    %55 = vector.broadcast %c1_i32 : i32 to vector<32x8xi32>
    %56 = arith.cmpi eq, %8, %55 : vector<32x8xi32>
    %cst_34 = arith.constant 0.000000e+00 : f32
    %57 = vector.shape_cast %54 : vector<32x1xf32> to vector<32x1xf32>
    %58 = vector.broadcast %57 : vector<32x1xf32> to vector<32x8xf32>
    %59 = vector.broadcast %cst_34 : f32 to vector<32x8xf32>
    %60 = arith.select %56, %58, %59 : vector<32x8xi1>, vector<32x8xf32>
    %61 = arith.addf %35, %60 : vector<32x8xf32>
    %c0_35 = arith.constant 0 : index
    %c64 = arith.constant 64 : index
    %62 = vector.load %arg2[%c0_35, %c64] : memref<32x256xf32, #tpu.memory_space<vmem>>, vector<32x32xf32>
    %63 = arith.truncf %62 : vector<32x32xf32> to vector<32x32xbf16>
    %c0_36 = arith.constant 0 : index
    %c0_37 = arith.constant 0 : index
    %64 = vector.load %arg3[%c0_36, %c0_37] : memref<32x32xbf16, #tpu.memory_space<vmem>>, vector<32x32xbf16>
    %cst_38 = arith.constant dense<0.000000e+00> : vector<32x32xf32>
    %65 = tpu.matmul %63, %64, %cst_38 {dimension_numbers = #tpu.dot_dimension_numbers<[1], [0], [0], [1], [0, 0, 1, 1], [], []>} : vector<32x32xbf16>, vector<32x32xbf16>, vector<32x32xf32> -> vector<32x32xf32>
    %66 = arith.addf %65, %6 : vector<32x32xf32>
    %cst_39 = arith.constant 0.000000e+00 : f32
    %67 = vector.broadcast %cst_39 : f32 to vector<32x32xf32>
    %68 = arith.maximumf %66, %67 : vector<32x32xf32>
    %69 = arith.truncf %68 : vector<32x32xf32> to vector<32x32xbf16>
    %c0_40 = arith.constant 0 : index
    %c0_41 = arith.constant 0 : index
    %70 = vector.load %arg6[%c0_40, %c0_41] : memref<32x32xbf16, #tpu.memory_space<vmem>>, vector<32x32xbf16>
    %cst_42 = arith.constant dense<0.000000e+00> : vector<32x32xf32>
    %71 = tpu.matmul %69, %70, %cst_42 {dimension_numbers = #tpu.dot_dimension_numbers<[1], [0], [0], [1], [0, 0, 1, 1], [], []>} : vector<32x32xbf16>, vector<32x32xbf16>, vector<32x32xf32> -> vector<32x32xf32>
    %c0_43 = arith.constant 0 : index
    %c0_44 = arith.constant 0 : index
    %72 = vector.load %arg7[%c0_43, %c0_44] : memref<1x32xf32, #tpu.memory_space<vmem>>, vector<1x32xf32>
    %73 = vector.broadcast %72 : vector<1x32xf32> to vector<32x32xf32>
    %74 = arith.addf %71, %73 : vector<32x32xf32>
    %cst_45 = arith.constant 0.000000e+00 : f32
    %75 = vector.broadcast %cst_45 : f32 to vector<32x32xf32>
    %76 = arith.maximumf %74, %75 : vector<32x32xf32>
    %77 = vector.broadcast %7 : vector<1x32xf32> to vector<32x32xf32>
    %78 = arith.mulf %76, %77 : vector<32x32xf32>
    %cst_46 = arith.constant dense<0.000000e+00> : vector<32xf32>
    %79 = vector.multi_reduction <add>, %78, %cst_46 [1] : vector<32x32xf32> to vector<32xf32>
    %80 = vector.shape_cast %79 : vector<32xf32> to vector<32x1xf32>
    %c2_i32 = arith.constant 2 : i32
    %81 = vector.broadcast %c2_i32 : i32 to vector<32x8xi32>
    %82 = arith.cmpi eq, %8, %81 : vector<32x8xi32>
    %cst_47 = arith.constant 0.000000e+00 : f32
    %83 = vector.shape_cast %80 : vector<32x1xf32> to vector<32x1xf32>
    %84 = vector.broadcast %83 : vector<32x1xf32> to vector<32x8xf32>
    %85 = vector.broadcast %cst_47 : f32 to vector<32x8xf32>
    %86 = arith.select %82, %84, %85 : vector<32x8xi1>, vector<32x8xf32>
    %87 = arith.addf %61, %86 : vector<32x8xf32>
    %c0_48 = arith.constant 0 : index
    %c96 = arith.constant 96 : index
    %88 = vector.load %arg2[%c0_48, %c96] : memref<32x256xf32, #tpu.memory_space<vmem>>, vector<32x32xf32>
    %89 = arith.truncf %88 : vector<32x32xf32> to vector<32x32xbf16>
    %c0_49 = arith.constant 0 : index
    %c0_50 = arith.constant 0 : index
    %90 = vector.load %arg3[%c0_49, %c0_50] : memref<32x32xbf16, #tpu.memory_space<vmem>>, vector<32x32xbf16>
    %cst_51 = arith.constant dense<0.000000e+00> : vector<32x32xf32>
    %91 = tpu.matmul %89, %90, %cst_51 {dimension_numbers = #tpu.dot_dimension_numbers<[1], [0], [0], [1], [0, 0, 1, 1], [], []>} : vector<32x32xbf16>, vector<32x32xbf16>, vector<32x32xf32> -> vector<32x32xf32>
    %92 = arith.addf %91, %6 : vector<32x32xf32>
    %cst_52 = arith.constant 0.000000e+00 : f32
    %93 = vector.broadcast %cst_52 : f32 to vector<32x32xf32>
    %94 = arith.maximumf %92, %93 : vector<32x32xf32>
    %95 = arith.truncf %94 : vector<32x32xf32> to vector<32x32xbf16>
    %c0_53 = arith.constant 0 : index
    %c0_54 = arith.constant 0 : index
    %96 = vector.load %arg6[%c0_53, %c0_54] : memref<32x32xbf16, #tpu.memory_space<vmem>>, vector<32x32xbf16>
    %cst_55 = arith.constant dense<0.000000e+00> : vector<32x32xf32>
    %97 = tpu.matmul %95, %96, %cst_55 {dimension_numbers = #tpu.dot_dimension_numbers<[1], [0], [0], [1], [0, 0, 1, 1], [], []>} : vector<32x32xbf16>, vector<32x32xbf16>, vector<32x32xf32> -> vector<32x32xf32>
    %c0_56 = arith.constant 0 : index
    %c0_57 = arith.constant 0 : index
    %98 = vector.load %arg7[%c0_56, %c0_57] : memref<1x32xf32, #tpu.memory_space<vmem>>, vector<1x32xf32>
    %99 = vector.broadcast %98 : vector<1x32xf32> to vector<32x32xf32>
    %100 = arith.addf %97, %99 : vector<32x32xf32>
    %cst_58 = arith.constant 0.000000e+00 : f32
    %101 = vector.broadcast %cst_58 : f32 to vector<32x32xf32>
    %102 = arith.maximumf %100, %101 : vector<32x32xf32>
    %103 = vector.broadcast %7 : vector<1x32xf32> to vector<32x32xf32>
    %104 = arith.mulf %102, %103 : vector<32x32xf32>
    %cst_59 = arith.constant dense<0.000000e+00> : vector<32xf32>
    %105 = vector.multi_reduction <add>, %104, %cst_59 [1] : vector<32x32xf32> to vector<32xf32>
    %106 = vector.shape_cast %105 : vector<32xf32> to vector<32x1xf32>
    %c3_i32 = arith.constant 3 : i32
    %107 = vector.broadcast %c3_i32 : i32 to vector<32x8xi32>
    %108 = arith.cmpi eq, %8, %107 : vector<32x8xi32>
    %cst_60 = arith.constant 0.000000e+00 : f32
    %109 = vector.shape_cast %106 : vector<32x1xf32> to vector<32x1xf32>
    %110 = vector.broadcast %109 : vector<32x1xf32> to vector<32x8xf32>
    %111 = vector.broadcast %cst_60 : f32 to vector<32x8xf32>
    %112 = arith.select %108, %110, %111 : vector<32x8xi1>, vector<32x8xf32>
    %113 = arith.addf %87, %112 : vector<32x8xf32>
    %c0_61 = arith.constant 0 : index
    %c128 = arith.constant 128 : index
    %114 = vector.load %arg2[%c0_61, %c128] : memref<32x256xf32, #tpu.memory_space<vmem>>, vector<32x32xf32>
    %115 = arith.truncf %114 : vector<32x32xf32> to vector<32x32xbf16>
    %c0_62 = arith.constant 0 : index
    %c0_63 = arith.constant 0 : index
    %116 = vector.load %arg3[%c0_62, %c0_63] : memref<32x32xbf16, #tpu.memory_space<vmem>>, vector<32x32xbf16>
    %cst_64 = arith.constant dense<0.000000e+00> : vector<32x32xf32>
    %117 = tpu.matmul %115, %116, %cst_64 {dimension_numbers = #tpu.dot_dimension_numbers<[1], [0], [0], [1], [0, 0, 1, 1], [], []>} : vector<32x32xbf16>, vector<32x32xbf16>, vector<32x32xf32> -> vector<32x32xf32>
    %118 = arith.addf %117, %6 : vector<32x32xf32>
    %cst_65 = arith.constant 0.000000e+00 : f32
    %119 = vector.broadcast %cst_65 : f32 to vector<32x32xf32>
    %120 = arith.maximumf %118, %119 : vector<32x32xf32>
    %121 = arith.truncf %120 : vector<32x32xf32> to vector<32x32xbf16>
    %c0_66 = arith.constant 0 : index
    %c0_67 = arith.constant 0 : index
    %122 = vector.load %arg6[%c0_66, %c0_67] : memref<32x32xbf16, #tpu.memory_space<vmem>>, vector<32x32xbf16>
    %cst_68 = arith.constant dense<0.000000e+00> : vector<32x32xf32>
    %123 = tpu.matmul %121, %122, %cst_68 {dimension_numbers = #tpu.dot_dimension_numbers<[1], [0], [0], [1], [0, 0, 1, 1], [], []>} : vector<32x32xbf16>, vector<32x32xbf16>, vector<32x32xf32> -> vector<32x32xf32>
    %c0_69 = arith.constant 0 : index
    %c0_70 = arith.constant 0 : index
    %124 = vector.load %arg7[%c0_69, %c0_70] : memref<1x32xf32, #tpu.memory_space<vmem>>, vector<1x32xf32>
    %125 = vector.broadcast %124 : vector<1x32xf32> to vector<32x32xf32>
    %126 = arith.addf %123, %125 : vector<32x32xf32>
    %cst_71 = arith.constant 0.000000e+00 : f32
    %127 = vector.broadcast %cst_71 : f32 to vector<32x32xf32>
    %128 = arith.maximumf %126, %127 : vector<32x32xf32>
    %129 = vector.broadcast %7 : vector<1x32xf32> to vector<32x32xf32>
    %130 = arith.mulf %128, %129 : vector<32x32xf32>
    %cst_72 = arith.constant dense<0.000000e+00> : vector<32xf32>
    %131 = vector.multi_reduction <add>, %130, %cst_72 [1] : vector<32x32xf32> to vector<32xf32>
    %132 = vector.shape_cast %131 : vector<32xf32> to vector<32x1xf32>
    %c4_i32 = arith.constant 4 : i32
    %133 = vector.broadcast %c4_i32 : i32 to vector<32x8xi32>
    %134 = arith.cmpi eq, %8, %133 : vector<32x8xi32>
    %cst_73 = arith.constant 0.000000e+00 : f32
    %135 = vector.shape_cast %132 : vector<32x1xf32> to vector<32x1xf32>
    %136 = vector.broadcast %135 : vector<32x1xf32> to vector<32x8xf32>
    %137 = vector.broadcast %cst_73 : f32 to vector<32x8xf32>
    %138 = arith.select %134, %136, %137 : vector<32x8xi1>, vector<32x8xf32>
    %139 = arith.addf %113, %138 : vector<32x8xf32>
    %c0_74 = arith.constant 0 : index
    %c160 = arith.constant 160 : index
    %140 = vector.load %arg2[%c0_74, %c160] : memref<32x256xf32, #tpu.memory_space<vmem>>, vector<32x32xf32>
    %141 = arith.truncf %140 : vector<32x32xf32> to vector<32x32xbf16>
    %c0_75 = arith.constant 0 : index
    %c0_76 = arith.constant 0 : index
    %142 = vector.load %arg3[%c0_75, %c0_76] : memref<32x32xbf16, #tpu.memory_space<vmem>>, vector<32x32xbf16>
    %cst_77 = arith.constant dense<0.000000e+00> : vector<32x32xf32>
    %143 = tpu.matmul %141, %142, %cst_77 {dimension_numbers = #tpu.dot_dimension_numbers<[1], [0], [0], [1], [0, 0, 1, 1], [], []>} : vector<32x32xbf16>, vector<32x32xbf16>, vector<32x32xf32> -> vector<32x32xf32>
    %144 = arith.addf %143, %6 : vector<32x32xf32>
    %cst_78 = arith.constant 0.000000e+00 : f32
    %145 = vector.broadcast %cst_78 : f32 to vector<32x32xf32>
    %146 = arith.maximumf %144, %145 : vector<32x32xf32>
    %147 = arith.truncf %146 : vector<32x32xf32> to vector<32x32xbf16>
    %c0_79 = arith.constant 0 : index
    %c0_80 = arith.constant 0 : index
    %148 = vector.load %arg6[%c0_79, %c0_80] : memref<32x32xbf16, #tpu.memory_space<vmem>>, vector<32x32xbf16>
    %cst_81 = arith.constant dense<0.000000e+00> : vector<32x32xf32>
    %149 = tpu.matmul %147, %148, %cst_81 {dimension_numbers = #tpu.dot_dimension_numbers<[1], [0], [0], [1], [0, 0, 1, 1], [], []>} : vector<32x32xbf16>, vector<32x32xbf16>, vector<32x32xf32> -> vector<32x32xf32>
    %c0_82 = arith.constant 0 : index
    %c0_83 = arith.constant 0 : index
    %150 = vector.load %arg7[%c0_82, %c0_83] : memref<1x32xf32, #tpu.memory_space<vmem>>, vector<1x32xf32>
    %151 = vector.broadcast %150 : vector<1x32xf32> to vector<32x32xf32>
    %152 = arith.addf %149, %151 : vector<32x32xf32>
    %cst_84 = arith.constant 0.000000e+00 : f32
    %153 = vector.broadcast %cst_84 : f32 to vector<32x32xf32>
    %154 = arith.maximumf %152, %153 : vector<32x32xf32>
    %155 = vector.broadcast %7 : vector<1x32xf32> to vector<32x32xf32>
    %156 = arith.mulf %154, %155 : vector<32x32xf32>
    %cst_85 = arith.constant dense<0.000000e+00> : vector<32xf32>
    %157 = vector.multi_reduction <add>, %156, %cst_85 [1] : vector<32x32xf32> to vector<32xf32>
    %158 = vector.shape_cast %157 : vector<32xf32> to vector<32x1xf32>
    %c5_i32 = arith.constant 5 : i32
    %159 = vector.broadcast %c5_i32 : i32 to vector<32x8xi32>
    %160 = arith.cmpi eq, %8, %159 : vector<32x8xi32>
    %cst_86 = arith.constant 0.000000e+00 : f32
    %161 = vector.shape_cast %158 : vector<32x1xf32> to vector<32x1xf32>
    %162 = vector.broadcast %161 : vector<32x1xf32> to vector<32x8xf32>
    %163 = vector.broadcast %cst_86 : f32 to vector<32x8xf32>
    %164 = arith.select %160, %162, %163 : vector<32x8xi1>, vector<32x8xf32>
    %165 = arith.addf %139, %164 : vector<32x8xf32>
    %c0_87 = arith.constant 0 : index
    %c192 = arith.constant 192 : index
    %166 = vector.load %arg2[%c0_87, %c192] : memref<32x256xf32, #tpu.memory_space<vmem>>, vector<32x32xf32>
    %167 = arith.truncf %166 : vector<32x32xf32> to vector<32x32xbf16>
    %c0_88 = arith.constant 0 : index
    %c0_89 = arith.constant 0 : index
    %168 = vector.load %arg3[%c0_88, %c0_89] : memref<32x32xbf16, #tpu.memory_space<vmem>>, vector<32x32xbf16>
    %cst_90 = arith.constant dense<0.000000e+00> : vector<32x32xf32>
    %169 = tpu.matmul %167, %168, %cst_90 {dimension_numbers = #tpu.dot_dimension_numbers<[1], [0], [0], [1], [0, 0, 1, 1], [], []>} : vector<32x32xbf16>, vector<32x32xbf16>, vector<32x32xf32> -> vector<32x32xf32>
    %170 = arith.addf %169, %6 : vector<32x32xf32>
    %cst_91 = arith.constant 0.000000e+00 : f32
    %171 = vector.broadcast %cst_91 : f32 to vector<32x32xf32>
    %172 = arith.maximumf %170, %171 : vector<32x32xf32>
    %173 = arith.truncf %172 : vector<32x32xf32> to vector<32x32xbf16>
    %c0_92 = arith.constant 0 : index
    %c0_93 = arith.constant 0 : index
    %174 = vector.load %arg6[%c0_92, %c0_93] : memref<32x32xbf16, #tpu.memory_space<vmem>>, vector<32x32xbf16>
    %cst_94 = arith.constant dense<0.000000e+00> : vector<32x32xf32>
    %175 = tpu.matmul %173, %174, %cst_94 {dimension_numbers = #tpu.dot_dimension_numbers<[1], [0], [0], [1], [0, 0, 1, 1], [], []>} : vector<32x32xbf16>, vector<32x32xbf16>, vector<32x32xf32> -> vector<32x32xf32>
    %c0_95 = arith.constant 0 : index
    %c0_96 = arith.constant 0 : index
    %176 = vector.load %arg7[%c0_95, %c0_96] : memref<1x32xf32, #tpu.memory_space<vmem>>, vector<1x32xf32>
    %177 = vector.broadcast %176 : vector<1x32xf32> to vector<32x32xf32>
    %178 = arith.addf %175, %177 : vector<32x32xf32>
    %cst_97 = arith.constant 0.000000e+00 : f32
    %179 = vector.broadcast %cst_97 : f32 to vector<32x32xf32>
    %180 = arith.maximumf %178, %179 : vector<32x32xf32>
    %181 = vector.broadcast %7 : vector<1x32xf32> to vector<32x32xf32>
    %182 = arith.mulf %180, %181 : vector<32x32xf32>
    %cst_98 = arith.constant dense<0.000000e+00> : vector<32xf32>
    %183 = vector.multi_reduction <add>, %182, %cst_98 [1] : vector<32x32xf32> to vector<32xf32>
    %184 = vector.shape_cast %183 : vector<32xf32> to vector<32x1xf32>
    %c6_i32 = arith.constant 6 : i32
    %185 = vector.broadcast %c6_i32 : i32 to vector<32x8xi32>
    %186 = arith.cmpi eq, %8, %185 : vector<32x8xi32>
    %cst_99 = arith.constant 0.000000e+00 : f32
    %187 = vector.shape_cast %184 : vector<32x1xf32> to vector<32x1xf32>
    %188 = vector.broadcast %187 : vector<32x1xf32> to vector<32x8xf32>
    %189 = vector.broadcast %cst_99 : f32 to vector<32x8xf32>
    %190 = arith.select %186, %188, %189 : vector<32x8xi1>, vector<32x8xf32>
    %191 = arith.addf %165, %190 : vector<32x8xf32>
    %c0_100 = arith.constant 0 : index
    %c224 = arith.constant 224 : index
    %192 = vector.load %arg2[%c0_100, %c224] : memref<32x256xf32, #tpu.memory_space<vmem>>, vector<32x32xf32>
    %193 = arith.truncf %192 : vector<32x32xf32> to vector<32x32xbf16>
    %c0_101 = arith.constant 0 : index
    %c0_102 = arith.constant 0 : index
    %194 = vector.load %arg3[%c0_101, %c0_102] : memref<32x32xbf16, #tpu.memory_space<vmem>>, vector<32x32xbf16>
    %cst_103 = arith.constant dense<0.000000e+00> : vector<32x32xf32>
    %195 = tpu.matmul %193, %194, %cst_103 {dimension_numbers = #tpu.dot_dimension_numbers<[1], [0], [0], [1], [0, 0, 1, 1], [], []>} : vector<32x32xbf16>, vector<32x32xbf16>, vector<32x32xf32> -> vector<32x32xf32>
    %196 = arith.addf %195, %6 : vector<32x32xf32>
    %cst_104 = arith.constant 0.000000e+00 : f32
    %197 = vector.broadcast %cst_104 : f32 to vector<32x32xf32>
    %198 = arith.maximumf %196, %197 : vector<32x32xf32>
    %199 = arith.truncf %198 : vector<32x32xf32> to vector<32x32xbf16>
    %c0_105 = arith.constant 0 : index
    %c0_106 = arith.constant 0 : index
    %200 = vector.load %arg6[%c0_105, %c0_106] : memref<32x32xbf16, #tpu.memory_space<vmem>>, vector<32x32xbf16>
    %cst_107 = arith.constant dense<0.000000e+00> : vector<32x32xf32>
    %201 = tpu.matmul %199, %200, %cst_107 {dimension_numbers = #tpu.dot_dimension_numbers<[1], [0], [0], [1], [0, 0, 1, 1], [], []>} : vector<32x32xbf16>, vector<32x32xbf16>, vector<32x32xf32> -> vector<32x32xf32>
    %c0_108 = arith.constant 0 : index
    %c0_109 = arith.constant 0 : index
    %202 = vector.load %arg7[%c0_108, %c0_109] : memref<1x32xf32, #tpu.memory_space<vmem>>, vector<1x32xf32>
    %203 = vector.broadcast %202 : vector<1x32xf32> to vector<32x32xf32>
    %204 = arith.addf %201, %203 : vector<32x32xf32>
    %cst_110 = arith.constant 0.000000e+00 : f32
    %205 = vector.broadcast %cst_110 : f32 to vector<32x32xf32>
    %206 = arith.maximumf %204, %205 : vector<32x32xf32>
    %207 = vector.broadcast %7 : vector<1x32xf32> to vector<32x32xf32>
    %208 = arith.mulf %206, %207 : vector<32x32xf32>
    %cst_111 = arith.constant dense<0.000000e+00> : vector<32xf32>
    %209 = vector.multi_reduction <add>, %208, %cst_111 [1] : vector<32x32xf32> to vector<32xf32>
    %210 = vector.shape_cast %209 : vector<32xf32> to vector<32x1xf32>
    %c7_i32 = arith.constant 7 : i32
    %211 = vector.broadcast %c7_i32 : i32 to vector<32x8xi32>
    %212 = arith.cmpi eq, %8, %211 : vector<32x8xi32>
    %cst_112 = arith.constant 0.000000e+00 : f32
    %213 = vector.shape_cast %210 : vector<32x1xf32> to vector<32x1xf32>
    %214 = vector.broadcast %213 : vector<32x1xf32> to vector<32x8xf32>
    %215 = vector.broadcast %cst_112 : f32 to vector<32x8xf32>
    %216 = arith.select %212, %214, %215 : vector<32x8xi1>, vector<32x8xf32>
    %217 = arith.addf %191, %216 : vector<32x8xf32>
    %cst_113 = arith.constant dense<0xFF800000> : vector<32xf32>
    %218 = vector.multi_reduction <maximumf>, %217, %cst_113 [1] : vector<32x8xf32> to vector<32xf32>
    %219 = vector.shape_cast %218 : vector<32xf32> to vector<32x1xf32>
    %220 = vector.broadcast %219 : vector<32x1xf32> to vector<32x8xf32>
    %221 = arith.subf %217, %220 : vector<32x8xf32>
    %222 = math.exp %221 : vector<32x8xf32>
    %cst_114 = arith.constant dense<0.000000e+00> : vector<32xf32>
    %223 = vector.multi_reduction <add>, %222, %cst_114 [1] : vector<32x8xf32> to vector<32xf32>
    %224 = vector.shape_cast %223 : vector<32xf32> to vector<32x1xf32>
    %225 = tpu.reciprocal %224 {approx = true} : vector<32x1xf32> -> vector<32x1xf32>
    %226 = vector.broadcast %225 : vector<32x1xf32> to vector<32x8xf32>
    %227 = arith.mulf %222, %226 : vector<32x8xf32>
    %c0_115 = arith.constant 0 : index
    %c0_116 = arith.constant 0 : index
    %228 = vector.load %arg9[%c0_115, %c0_116] : memref<32x8xf32, #tpu.memory_space<vmem>>, vector<32x8xf32>
    tpu.vector_store %arg9[%c0_115, %c0_116], %227 {strides = array<i32>} : memref<32x8xf32, #tpu.memory_space<vmem>>, vector<32x8xf32>,
    return
  }
  func.func @transform_0(%arg0: i32) -> (i32, i32) {
    %c0_i32 = arith.constant 0 : i32
    %c0_i32_0 = arith.constant 0 : i32
    return %arg0, %c0_i32 : i32, i32
  }
  func.func @transform_1(%arg0: i32) -> (i32, i32) {
    %c0_i32 = arith.constant 0 : i32
    %c0_i32_0 = arith.constant 0 : i32
    return %arg0, %c0_i32 : i32, i32
  }
  func.func @transform_2(%arg0: i32) -> (i32, i32) {
    %c0_i32 = arith.constant 0 : i32
    %c0_i32_0 = arith.constant 0 : i32
    %c0_i32_1 = arith.constant 0 : i32
    return %c0_i32, %c0_i32_0 : i32, i32
  }
  func.func @transform_3(%arg0: i32) -> (i32, i32) {
    %c0_i32 = arith.constant 0 : i32
    %c0_i32_0 = arith.constant 0 : i32
    %c0_i32_1 = arith.constant 0 : i32
    return %c0_i32, %c0_i32_0 : i32, i32
  }
  func.func @transform_4(%arg0: i32) -> (i32, i32) {
    %c0_i32 = arith.constant 0 : i32
    %c0_i32_0 = arith.constant 0 : i32
    %c0_i32_1 = arith.constant 0 : i32
    return %c0_i32, %c0_i32_0 : i32, i32
  }
  func.func @transform_5(%arg0: i32) -> (i32, i32) {
    %c0_i32 = arith.constant 0 : i32
    %c0_i32_0 = arith.constant 0 : i32
    %c0_i32_1 = arith.constant 0 : i32
    return %c0_i32, %c0_i32_0 : i32, i32
  }
  func.func @transform_6(%arg0: i32) -> (i32, i32) {
    %c0_i32 = arith.constant 0 : i32
    %c0_i32_0 = arith.constant 0 : i32
    %c0_i32_1 = arith.constant 0 : i32
    return %c0_i32, %c0_i32_0 : i32, i32
  }
  func.func @transform_7(%arg0: i32) -> (i32, i32) {
    %c0_i32 = arith.constant 0 : i32
    %c0_i32_0 = arith.constant 0 : i32
    %c0_i32_1 = arith.constant 0 : i32
    return %c0_i32, %c0_i32_0 : i32, i32
  }
  func.func @transform_8(%arg0: i32) -> (i32, i32) {
    %c0_i32 = arith.constant 0 : i32
    %c0_i32_0 = arith.constant 0 : i32
    return %arg0, %c0_i32 : i32, i32
  }
}

</mosaic_0001>

<bundles_post_ra>
// kernel: tpu_custom_call.1
= control target key start
LH: loop header
LB: loop body
LE: loop exit
PB: predicated region body
PF: predicated region fallthrough
CT: control target
= control target key end

     0   :  { %13 = vsyncpa [#allocation3], 0  ;;  %s2745_s0 = inlined_call_operand.vmem [shape: f32[64,32], index: 0, kind: input, shape index: {}]   ;;  %s2746_s1 = inlined_call_operand.hbm [shape: f32[64,256], index: 1, kind: input, shape index: {}]   ;;  %s2747_s2 = inlined_call_operand.vmem [shape: bf16[32,32], index: 2, kind: input, shape index: {}]   ;;  %s2748_s3 = inlined_call_operand.vmem [shape: bf16[32,32], index: 3, kind: input, shape index: {}]   ;;  %s2749_s4 = inlined_call_operand.vmem [shape: f32[1,32], index: 4, kind: input, shape index: {}]   ;;  %s2750_s5 = inlined_call_operand.vmem [shape: bf16[32,32], index: 5, kind: input, shape index: {}]   ;;  %s2751_s6 = inlined_call_operand.vmem [shape: f32[1,32], index: 6, kind: input, shape index: {}]   ;;  %s2752_s7 = inlined_call_operand.vmem [shape: f32[1,32], index: 7, kind: input, shape index: {}]   ;;  %s2753_s8 = inlined_call_operand.vmem [shape: f32[64,8], index: 8, kind: output, shape index: {}]  }
   0x1   :  { %15 = vsyncpa [#allocation3 + $0x1], 0  ;;  %s2261_s27 = smov 0   ;;  %s2263_s28 = smov 0  }
   0x2   :  { %s2265_s29 = smov 0   ;;  %s2267_s30 = smov 0  }
   0x3 LB: > { %s1813_s9 = sadd.s32 4294967295, %s2208_s30   ;;  %s2281_s10 = sadd.s32 1, %s2208_s30   ;;  %s2208_s30 = sphi %s2267_s30, %s2760_s30   ;;  %s2204_s29 = sphi %s2265_s29, %s2759_s29   ;;  %s2200_s28 = sphi %s2263_s28, %s2758_s28   ;;  %s2196_s27 = sphi %s2261_s27, %s2757_s27  }
   0x4   : > { %s51_s11 = ssub.s32 %s2208_s30, %s2281_s10  ;;  %s54_s12 = sadd.s32 1, %s2204_s29 }
   0x5   : > { %p52_p0 = scmp.eq.s32.totalorder %s51_s11, 0  ;;  %p61_p1 = scmp.ne.s32.totalorder %s2204_s29, %s2200_s28 }
   0x6   : > { %p62_p2 = scmp.eq.s32.totalorder %s2208_s30, 0  ;;  %p67_p3 = scmp.ne.s32.totalorder %s2200_s28, %s2196_s27 }
   0x7   : > { %s2291_s13 = scalar_select %p52_p0, %s2204_s29, %s54_s12  }
   0x8   : > { %p63_p4 = por %p62_p2, %p61_p1  ;;  %p68_p5 = scmp.eq.s32.totalorder %s1813_s9, 0 }
   0x9   : > { %p2084_p6 = scmp.lt.s32.totalorder %s2208_s30, 2  ;;  %s270_s15 = sand.u32 1, %s2204_s29  }
   0xa   : > { %p2296_p7 = por %p68_p5, %p67_p3  ;;  %s1817_s16 = sshll.u32 %s270_s15, 6 }
   0xb   : > { %s1873_s17 = sshll.u32 %s2208_s30, 10  ;;  %s274_s21 = scalar_lea.vmem [#allocation2], %s1817_s16 }
   0xc   : > { %s2305_s20 = scalar_lea.hbm %s2746_s1, %s1873_s17  ;;  %s282_s22 = sshll.u32 %s274_s21, 4  ;;  %s2307_s22 = int_to_ptr.vmem [resolvable:$true] %s282_s22 }
   0xd   : > { %p2309_p8 = pnand %p2084_p6, %p63_p4  ;;  %s2314_s24 = scalar_lea.sflag [#allocation3], %s270_s15 }
   0xe   : > { %s2144_s25 = scalar_lea.hbm %s2305_s20, 1024  ;;  %s2149_s11 = scalar_lea.hbm %s2746_s1, 2048 }
   0xf   : > { %p2145_p10 = scmp.ne.s32.totalorder %s2305_s20, %s2144_s25  ;;  %p2146_p11 = pneg %p2309_p8 }
  0x10   : > { %p2150_p0 = scmp.lt.u32.totalorder %s2305_s20, %s2746_s1  ;;  %p2151_p1 = scmp.lt.u32.totalorder %s2149_s11, %s2144_s25 }
  0x11   : > { %p2147_p12 = pnand %p2146_p11, %p2145_p10  ;;  %p2153_p3 = scmp.lt.u32.totalorder %s2144_s25, %s2305_s20 }
  0x12   : > { %p2152_p2 = por %p2151_p1, %p2150_p0 }
  0x13   : > { %p2148_p13 = pneg %p2147_p12 }
  0x14   : > { %p2154_p4 = por %p2153_p3, %p2152_p2 }
  0x16   : > { %p2155_p5 = pnand %p2154_p4, %p2148_p13 }
  0x18   : > { %2158 = shalt.err (!%p2155_p5)
}
  0x19   : > { %s2159_s15 = scalar_lea.vmem %s2307_s22, 1024  ;;  %s2210_s17 = smov [#allocation2]  }
  0x1a   : > { %p2160_p6 = scmp.ne.s32.totalorder %s2307_s22, %s2159_s15  ;;  %s2164_s18 = sshll.u32 %s2210_s17, 4  ;;  %s2165_s18 = int_to_ptr.vmem [resolvable:$false] %s2164_s18 }
  0x1b   : > { %s2166_s19 = scalar_lea.vmem %s2165_s18, 2048  ;;  %p2167_p9 = scmp.lt.s32.totalorder %s2307_s22, %s2165_s18 }
  0x1c   : > { %p2162_p10 = pnand %p2160_p6, %p2146_p11  ;;  %p2168_p0 = scmp.lt.s32.totalorder %s2166_s19, %s2159_s15 }
  0x1e   : > { %p2163_p12 = pneg %p2162_p10  ;;  %p2169_p1 = por %p2168_p0, %p2167_p9 }
  0x20   : > { %p2170_p2 = pnand %p2169_p1, %p2163_p12 }
  0x22   : > { %2173 = shalt.err (!%p2170_p2)
}
  0x23   : > { %s2211_s21 = smov 256   ;;  %s2212_s25 = smov 16  }
  0x24   : > { %2083 = dma.hbm_to_vmem [thread:$0]  (!%p2309_p8), %s2305_s20, 1024, %s2307_s22, %s2314_s24, %s2211_s21, %s2211_s21, %s2212_s25  }
  0x25   : > { %p290_p11 = scmp.lt.s32.totalorder %s2208_s30, 3  ;;  %p2756_p13 = scmp.ge.s32.totalorder %s2208_s30, 1 }
  0x27   : > { %p291_p3 = pnand %p2756_p13, %p290_p11 }
  0x28   : > { %s296_s26 = sand.u32 (!%p291_p3), 1, %s2200_s28  }
  0x29   : > { %294 = sbr.rel (%p291_p3) target bundleno = 1130 (0x46a), region = 52  ;;  %s1822_s27 = sshll.u32 (!%p291_p3), %s296_s26, 6 }
  0x2a   : > { %s297_s11 = scalar_lea.sflag (!%p291_p3), [#allocation3], %s296_s26  ;;  %s300_s12 = scalar_lea.vmem (!%p291_p3), [#allocation2], %s1822_s27 }
  0x30   : > { %2191 = dma.done.wait (%p2296_p7), %s297_s11, 1024  }
  0x31   : > { %2193 = vsyncadd (%p2296_p7), %s297_s11, 4294966272  ;;  %s1823_s16 = sshll.u32 %s1813_s9, 2  ;;  %v440_v0 = vld [vmem:[%s300_s12] sm:$0xff]  ;;  %v441_v1 = vld [vmem:[%s300_s12 + $0x10] sm:$0xff]  ;;  %s2213_s22 = smov 96   ;;  %vm381_vm0 = vcmask 261120  }
  0x32   : > { %p339_p9 = scmp.lt.s32.totalorder %s1823_s16, 7  ;;  %v442_v2 = vld [vmem:[%s300_s12 + $0x20] sm:$0xff]  ;;  %v444_v3 = vpack.c.bf16 %v441_v1, %v440_v0  ;;  %v443_v4 = vld [vmem:[%s300_s12 + $0x30] sm:$0xff]  ;;  %s2214_s14 = smov 64   ;;  %v2124_v8 = vld [vmem:[%s2748_s3 + $0x8] sm:$0xff]   ;;  %vm1685_vm9 = vcmask 64512  }
  0x33   : > { %v445_v5 = vpack.c.bf16 %v443_v4, %v442_v2  ;;  %v2122_v6 = vld [vmem:[%s2748_s3] sm:$0xff]   ;;  %v1085_v9 = vld [vmem:[%s300_s12 + $0x8] sm:$0xff]  ;;  %v1086_v10 = vld [vmem:[%s300_s12 + $0x18] sm:$0xff]  ;;  %s2215_s27 = smov 32  }
  0x34   : > { %s2762_s16 = smov (!%p339_p9, %s1823_s16), 7  ;;  %638 = vrot.lane.b32.xlu0 %v444_v3, %s2213_s22  ;;  %787 = vrot.lane.b32.xlu1 %v444_v3, %s2214_s14  ;;  %v2363_v7 = vld [vmem:[%s2747_s2] sm:$0xff]   ;;  %v1087_v11 = vld [vmem:[%s300_s12 + $0x28] sm:$0xff]  ;;  %v1089_v20 = vpack.c.bf16 %v1086_v10, %v1085_v9 }
  0x35   : > { %s1824_s20 = sshll.u32 %s2762_s16, 3  ;;  %1954 = vmatprep.mubr.msk.bf16.mxu1 %vm381_vm0, %v444_v3  ;;  %1942 = vmatprep.subr.bf16.mxu0 %v2122_v6  ;;  %v1088_v12 = vld [vmem:[%s300_s12 + $0x38] sm:$0xff]  ;;  %v2378_v13 = vld [vmem:[%s2747_s2 + $0x8] sm:$0xff]   ;;  %v2400_v22 = vld [vmem:[%s2750_s5] sm:$0xff]  }
  0x36   : > { %s342_s18 = scalar_lea.vmem %s2745_s0, %s1824_s20  ;;  %1943 = vmatpush3.bf16.msra.mxu0 %v2122_v6  ;;  %1950 = vmatprep.subr.bf16.mxu1 %v2363_v7  ;;  %v1090_v21 = vpack.c.bf16 %v1088_v12, %v1087_v11  ;;  %v2405_v23 = vld [vmem:[%s2750_s5 + $0x8] sm:$0xff]   ;;  %v1827_v36 = vld [vmem:[%s2749_s4] ss:$0 sm:$0xff]  ;;  %s349_s21 = scalar_lea.vmem %s2753_s8, %s1824_s20 }
  0x37   : > { %v352_v14 = vld [vmem:[%s342_s18] sm:$0xff]  ;;  %v353_v15 = vld [vmem:[%s342_s18 + $0x8] sm:$0xff]  ;;  %1951 = vmatpush3.bf16.msra.mxu1 %v2363_v7  ;;  %1944 = vmatprep.subr.bf16.mxu0 %v2124_v8  ;;  %v354_v17 = vld [vmem:[%s342_s18 + $0x10] sm:$0xff] }
  0x38   : > { %640 = vrot.lane.b32.xlu0 %v445_v5, %s2213_s22  ;;  %789 = vrot.lane.b32.xlu1 %v445_v5, %s2214_s14  ;;  %v356_v16 = vpack.c.bf16 %v353_v15, %v352_v14  ;;  %v355_v18 = vld [vmem:[%s342_s18 + $0x18] sm:$0xff] }
  0x39   : > { %1952 = vmatprep.subr.bf16.mxu1 %v2378_v13  ;;  %v357_v19 = vpack.c.bf16 %v355_v18, %v354_v17 }
  0x3a   : > { %1945 = vmatpush3.bf16.msra.mxu0 %v2124_v8  ;;  %1946 = vmatprep.mubr.msk.bf16.mxu0 %vm381_vm0, %v356_v16 }
  0x3b   : > { %1953 = vmatpush3.bf16.msra.mxu1 %v2378_v13  ;;  %1958 = vmatprep.subr.bf16.mxu0 %v2400_v22 }
  0x3c   : > { %936 = vrot.lane.b32.xlu0 %v444_v3, %s2215_s27  ;;  %938 = vrot.lane.b32.xlu1 %v445_v5, %s2215_s27 }
  0x3d   : > { %1947 = vmatmul.mubr.msk.bf16.vlgmr.msra.gmra.mrb[0].mxu0 %vm381_vm0, %v357_v19  ;;  %1966 = vmatprep.subr.bf16.mxu1 %v2363_v7 }
  0x3e   : > { %1955 = vmatmul.mubr.msk.bf16.vlgmr.msra.gmra.mrb[0].mxu1 %vm381_vm0, %v445_v5  ;;  %1959 = vmatpush3.bf16.msra.mxu0 %v2400_v22 }
  0x3f   : > { %1967 = vmatpush3.bf16.msra.mxu1 %v2363_v7  ;;  %1960 = vmatprep.subr.bf16.mxu0 %v2405_v23 }
  0x40   : > { %1238 = vrot.lane.b32.xlu0 %v1089_v20, %s2213_s22  ;;  %1240 = vrot.lane.b32.xlu1 %v1090_v21, %s2213_s22 }
  0x41   : > { %1968 = vmatprep.subr.bf16.mxu1 %v2378_v13 }
  0x42   : > { %1961 = vmatpush3.bf16.msra.mxu0 %v2405_v23 }
  0x43   : > { %1969 = vmatpush3.bf16.msra.mxu1 %v2378_v13  ;;  %1974 = vmatprep.subr.bf16.mxu0 %v2400_v22 }
  0x44   : > { %1387 = vrot.lane.b32.xlu0 %v1089_v20, %s2214_s14  ;;  %1389 = vrot.lane.b32.xlu1 %v1090_v21, %s2214_s14 }
  0x45   : > { %1982 = vmatprep.subr.bf16.mxu1 %v2363_v7 }
  0x48   : > { %1536 = vrot.lane.b32.xlu0 %v1089_v20, %s2215_s27  ;;  %1538 = vrot.lane.b32.xlu1 %v1090_v21, %s2215_s27 }
  0xa6   : > { %v639_v24 = vpop.permute.xlu0 %638  ;;  %v788_v25 = vpop.permute.xlu1 %787 }
  0xa7   : > { %1970 = vmatprep.mubr.msk.bf16.mxu1 %vm381_vm0, %v639_v24 }
  0xaa   : > { %v641_v26 = vpop.permute.xlu0 %640  ;;  %v790_v27 = vpop.permute.xlu1 %789 }
  0xab   : > { %1971 = vmatmul.mubr.msk.bf16.vlgmr.msra.gmra.mrb[4].mxu1 %vm381_vm0, %v641_v26 }
  0xac   : > { %1983 = vmatpush3.bf16.msra.mxu1 %v2363_v7  ;;  %1986 = vmatprep.mubr.msk.bf16.mxu1 %vm381_vm0, %v788_v25 }
  0xad   : > { %1984 = vmatprep.subr.bf16.mxu1 %v2378_v13 }
  0xae   : > { %v937_v28 = vpop.permute.xlu0 %936  ;;  %v939_v29 = vpop.permute.xlu1 %938 }
  0xb0   : > { %1985 = vmatpush3.bf16.msra.mxu1 %v2378_v13 }
  0xb1   : > { %1998 = vmatprep.subr.bf16.mxu1 %v2363_v7 }
  0xb2   : > { %v1239_v30 = vpop.permute.xlu0 %1238  ;;  %v1241_v31 = vpop.permute.xlu1 %1240 }
  0xb3   : > { %1987 = vmatmul.mubr.msk.bf16.vlgmr.msra.gmra.mrb[8].mxu1 %vm381_vm0, %v790_v27 }
  0xb4   : > { %1999 = vmatpush3.bf16.msra.mxu1 %v2363_v7  ;;  %2002 = vmatprep.mubr.msk.bf16.mxu1 %vm381_vm0, %v937_v28 }
  0xb5   : > { %2000 = vmatprep.subr.bf16.mxu1 %v2378_v13 }
  0xb6   : > { %v1388_v32 = vpop.permute.xlu0 %1387  ;;  %v1390_v33 = vpop.permute.xlu1 %1389 }
  0xb8   : > { %2001 = vmatpush3.bf16.msra.mxu1 %v2378_v13 }
  0xb9   : > { %2014 = vmatprep.subr.bf16.mxu1 %v2363_v7 }
  0xba   : > { %v1537_v34 = vpop.permute.xlu0 %1536  ;;  %v1539_v35 = vpop.permute.xlu1 %1538 }
  0xbb   : > { %2003 = vmatmul.mubr.msk.bf16.vlgmr.msra.gmra.mrb[12].mxu1 %vm381_vm0, %v939_v29 }
  0xbc   : > { %2015 = vmatpush3.bf16.msra.mxu1 %v2363_v7  ;;  %2018 = vmatprep.mubr.msk.bf16.mxu1 %vm381_vm0, %v1089_v20 }
  0xbd   : > { %2016 = vmatprep.subr.bf16.mxu1 %v2378_v13 }
  0xc0   : > { %2017 = vmatpush3.bf16.msra.mxu1 %v2378_v13 }
  0xc1   : > { %2030 = vmatprep.subr.bf16.mxu1 %v2363_v7 }
  0xc3   : > { %2019 = vmatmul.mubr.msk.bf16.vlgmr.msra.gmra.mrb[16].mxu1 %vm381_vm0, %v1090_v21 }
  0xc4   : > { %2031 = vmatpush3.bf16.msra.mxu1 %v2363_v7  ;;  %2034 = vmatprep.mubr.msk.bf16.mxu1 %vm381_vm0, %v1239_v30 }
  0xc5   : > { %2032 = vmatprep.subr.bf16.mxu1 %v2378_v13 }
  0xc8   : > { %2033 = vmatpush3.bf16.msra.mxu1 %v2378_v13 }
  0xc9   : > { %2046 = vmatprep.subr.bf16.mxu1 %v2363_v7 }
  0xcb   : > { %2035 = vmatmul.mubr.msk.bf16.vlgmr.msra.gmra.mrb[20].mxu1 %vm381_vm0, %v1241_v31 }
  0xcc   : > { %2047 = vmatpush3.bf16.msra.mxu1 %v2363_v7  ;;  %2050 = vmatprep.mubr.msk.bf16.mxu1 %vm381_vm0, %v1388_v32 }
  0xcd   : > { %2048 = vmatprep.subr.bf16.mxu1 %v2378_v13 }
  0xd0   : > { %2049 = vmatpush3.bf16.msra.mxu1 %v2378_v13 }
  0xd1   : > { %2062 = vmatprep.subr.bf16.mxu1 %v2363_v7 }
  0xd3   : > { %2051 = vmatmul.mubr.msk.bf16.vlgmr.msra.gmra.mrb[24].mxu1 %vm381_vm0, %v1390_v33 }
  0xd4   : > { %2063 = vmatpush3.bf16.msra.mxu1 %v2363_v7  ;;  %2066 = vmatprep.mubr.msk.bf16.mxu1 %vm381_vm0, %v1537_v34 }
  0xd5   : > { %2064 = vmatprep.subr.bf16.mxu1 %v2378_v13 }
  0xd8   : > { %2065 = vmatpush3.bf16.msra.mxu1 %v2378_v13 }
  0xdb   : > { %2067 = vmatmul.mubr.msk.bf16.vlgmr.msra.gmra.mrb[28].mxu1 %vm381_vm0, %v1539_v35 }
 0x110   : > { %v1948_v37 = vpop.f32.mrb[0].mxu0 }
 0x111   : > { %v2452_v38 = vadd.f32 %v1948_v37, %v1827_v36  ;;  %v422_v39 = vpop.f32.mrb[1].mxu0  ;;  %v1956_v43 = vpop.f32.mrb[0].mxu1 }
 0x112   : > { %v2454_v40 = vadd.f32 %v1827_v36, %v422_v39  ;;  %v1949_v41 = vpop.f32.mrb[2].mxu0  ;;  %v502_v47 = vpop.f32.mrb[1].mxu1 }
 0x113   : > { %v2456_v42 = vadd.f32 %v1949_v41, %v1827_v36  ;;  %v425_v44 = vpop.f32.mrb[3].mxu0  ;;  %v511_v45 = vadd.f32 %v1956_v43, %v2452_v38  ;;  %v1957_v49 = vpop.f32.mrb[2].mxu1 }
 0x114   : > { %v2459_v46 = vadd.f32 %v1827_v36, %v425_v44  ;;  %v503_v48 = vadd.f32 %v502_v47, %v2454_v40  ;;  %v505_v52 = vpop.f32.mrb[3].mxu1 }
 0x115   : > { %v519_v50 = vmax.f32 %v511_v45, 0.0  ;;  %v514_v51 = vadd.f32 %v1957_v49, %v2456_v42 }
 0x116   : > { %v517_v53 = vmax.f32 %v503_v48, 0.0  ;;  %v506_v54 = vadd.f32 %v505_v52, %v2459_v46 }
 0x117   : > { %v520_v55 = vmax.f32 %v514_v51, 0.0 }
 0x118   : > { %v518_v56 = vmax.f32 %v506_v54, 0.0 }
 0x119   : > { %v522_v57 = vpack.c.bf16 %v520_v55, %v519_v50 }
 0x11a   : > { %v521_v58 = vpack.c.bf16 %v518_v56, %v517_v53 }
 0x11c   : > { %1962 = vmatprep.mubr.msk.bf16.mxu0 %vm381_vm0, %v521_v58 }
 0x11d   : > { %1963 = vmatmul.mubr.msk.bf16.vlgmr.msra.gmra.mrb[4].mxu0 %vm381_vm0, %v522_v57 }
 0x11e   : > { %1975 = vmatpush3.bf16.msra.mxu0 %v2400_v22 }
 0x11f   : > { %1976 = vmatprep.subr.bf16.mxu0 %v2405_v23 }
 0x122   : > { %1977 = vmatpush3.bf16.msra.mxu0 %v2405_v23 }
 0x123   : > { %1990 = vmatprep.subr.bf16.mxu0 %v2400_v22 }
 0x17e   : > { %v1972_v59 = vpop.f32.mrb[4].mxu1 }
 0x17f   : > { %v691_v60 = vadd.f32 %v1972_v59, %v2452_v38  ;;  %v682_v61 = vpop.f32.mrb[5].mxu1 }
 0x180   : > { %v683_v62 = vadd.f32 %v682_v61, %v2454_v40  ;;  %v1973_v63 = vpop.f32.mrb[6].mxu1 }
 0x181   : > { %v694_v0 = vadd.f32 %v1973_v63, %v2456_v42  ;;  %v685_v1 = vpop.f32.mrb[7].mxu1  ;;  %v699_v3 = vmax.f32 %v691_v60, 0.0 }
 0x182   : > { %v686_v2 = vadd.f32 %v685_v1, %v2459_v46  ;;  %v697_v5 = vmax.f32 %v683_v62, 0.0 }
 0x183   : > { %v700_v4 = vmax.f32 %v694_v0, 0.0 }
 0x184   : > { %v698_v6 = vmax.f32 %v686_v2, 0.0 }
 0x185   : > { %v702_v7 = vpack.c.bf16 %v700_v4, %v699_v3 }
 0x186   : > { %v701_v8 = vpack.c.bf16 %v698_v6, %v697_v5  ;;  %v1988_v9 = vpop.f32.mrb[8].mxu1 }
 0x187   : > { %v840_v10 = vadd.f32 %v1988_v9, %v2452_v38  ;;  %v831_v11 = vpop.f32.mrb[9].mxu1 }
 0x188   : > { %v832_v12 = vadd.f32 %v831_v11, %v2454_v40  ;;  %1978 = vmatprep.mubr.msk.bf16.mxu0 %vm381_vm0, %v701_v8  ;;  %v1989_v13 = vpop.f32.mrb[10].mxu1 }
 0x189   : > { %v843_v14 = vadd.f32 %v1989_v13, %v2456_v42  ;;  %1979 = vmatmul.mubr.msk.bf16.vlgmr.msra.gmra.mrb[8].mxu0 %vm381_vm0, %v702_v7  ;;  %v834_v15 = vpop.f32.mrb[11].mxu1  ;;  %v848_v17 = vmax.f32 %v840_v10, 0.0 }
 0x18a   : > { %v835_v16 = vadd.f32 %v834_v15, %v2459_v46  ;;  %1991 = vmatpush3.bf16.msra.mxu0 %v2400_v22  ;;  %v846_v19 = vmax.f32 %v832_v12, 0.0 }
 0x18b   : > { %v849_v18 = vmax.f32 %v843_v14, 0.0  ;;  %1992 = vmatprep.subr.bf16.mxu0 %v2405_v23 }
 0x18c   : > { %v847_v20 = vmax.f32 %v835_v16, 0.0 }
 0x18d   : > { %v851_v21 = vpack.c.bf16 %v849_v18, %v848_v17 }
 0x18e   : > { %v850_v24 = vpack.c.bf16 %v847_v20, %v846_v19  ;;  %1993 = vmatpush3.bf16.msra.mxu0 %v2405_v23  ;;  %v2004_v25 = vpop.f32.mrb[12].mxu1 }
 0x18f   : > { %v989_v26 = vadd.f32 %v2004_v25, %v2452_v38  ;;  %v980_v27 = vpop.f32.mrb[13].mxu1  ;;  %2006 = vmatprep.subr.bf16.mxu0 %v2400_v22 }
 0x190   : > { %v981_v28 = vadd.f32 %v980_v27, %v2454_v40  ;;  %1994 = vmatprep.mubr.msk.bf16.mxu0 %vm381_vm0, %v850_v24  ;;  %v2005_v29 = vpop.f32.mrb[14].mxu1 }
 0x191   : > { %v992_v30 = vadd.f32 %v2005_v29, %v2456_v42  ;;  %1995 = vmatmul.mubr.msk.bf16.vlgmr.msra.gmra.mrb[12].mxu0 %vm381_vm0, %v851_v21  ;;  %v983_v31 = vpop.f32.mrb[15].mxu1  ;;  %v997_v33 = vmax.f32 %v989_v26, 0.0 }
 0x192   : > { %v984_v32 = vadd.f32 %v983_v31, %v2459_v46  ;;  %2007 = vmatpush3.bf16.msra.mxu0 %v2400_v22  ;;  %v995_v35 = vmax.f32 %v981_v28, 0.0 }
 0x193   : > { %v998_v34 = vmax.f32 %v992_v30, 0.0  ;;  %2008 = vmatprep.subr.bf16.mxu0 %v2405_v23 }
 0x194   : > { %v996_v36 = vmax.f32 %v984_v32, 0.0 }
 0x195   : > { %v1000_v37 = vpack.c.bf16 %v998_v34, %v997_v33 }
 0x196   : > { %v999_v39 = vpack.c.bf16 %v996_v36, %v995_v35  ;;  %2009 = vmatpush3.bf16.msra.mxu0 %v2405_v23  ;;  %v2020_v41 = vpop.f32.mrb[16].mxu1 }
 0x197   : > { %v1140_v43 = vadd.f32 %v2020_v41, %v2452_v38  ;;  %v1131_v44 = vpop.f32.mrb[17].mxu1  ;;  %2022 = vmatprep.subr.bf16.mxu0 %v2400_v22 }
 0x198   : > { %v1132_v45 = vadd.f32 %v1131_v44, %v2454_v40  ;;  %2010 = vmatprep.mubr.msk.bf16.mxu0 %vm381_vm0, %v999_v39  ;;  %v2021_v47 = vpop.f32.mrb[18].mxu1 }
 0x199   : > { %v1143_v48 = vadd.f32 %v2021_v47, %v2456_v42  ;;  %2011 = vmatmul.mubr.msk.bf16.vlgmr.msra.gmra.mrb[16].mxu0 %vm381_vm0, %v1000_v37  ;;  %v1134_v49 = vpop.f32.mrb[19].mxu1  ;;  %v1148_v51 = vmax.f32 %v1140_v43, 0.0  ;;  %v2546_v43 = vld [vmem:[%s2752_s7] ss:$0 sm:$0xff] }
 0x19a   : > { %v1135_v50 = vadd.f32 %v1134_v49, %v2459_v46  ;;  %2023 = vmatpush3.bf16.msra.mxu0 %v2400_v22  ;;  %v1146_v53 = vmax.f32 %v1132_v45, 0.0 }
 0x19b   : > { %v1149_v52 = vmax.f32 %v1143_v48, 0.0  ;;  %2024 = vmatprep.subr.bf16.mxu0 %v2405_v23 }
 0x19c   : > { %v1147_v54 = vmax.f32 %v1135_v50, 0.0 }
 0x19d   : > { %v1151_v55 = vpack.c.bf16 %v1149_v52, %v1148_v51 }
 0x19e   : > { %v1150_v56 = vpack.c.bf16 %v1147_v54, %v1146_v53  ;;  %2025 = vmatpush3.bf16.msra.mxu0 %v2405_v23  ;;  %v2036_v57 = vpop.f32.mrb[20].mxu1 }
 0x19f   : > { %v1291_v58 = vadd.f32 %v2036_v57, %v2452_v38  ;;  %v1282_v59 = vpop.f32.mrb[21].mxu1  ;;  %2038 = vmatprep.subr.bf16.mxu0 %v2400_v22 }
 0x1a0   : > { %v1283_v60 = vadd.f32 %v1282_v59, %v2454_v40  ;;  %2026 = vmatprep.mubr.msk.bf16.mxu0 %vm381_vm0, %v1150_v56  ;;  %v2037_v61 = vpop.f32.mrb[22].mxu1 }
 0x1a1   : > { %v1294_v62 = vadd.f32 %v2037_v61, %v2456_v42  ;;  %2027 = vmatmul.mubr.msk.bf16.vlgmr.msra.gmra.mrb[20].mxu0 %vm381_vm0, %v1151_v55  ;;  %v1285_v63 = vpop.f32.mrb[23].mxu1  ;;  %v1299_v1 = vmax.f32 %v1291_v58, 0.0 }
 0x1a2   : > { %v1286_v0 = vadd.f32 %v1285_v63, %v2459_v46  ;;  %2039 = vmatpush3.bf16.msra.mxu0 %v2400_v22  ;;  %v1297_v3 = vmax.f32 %v1283_v60, 0.0 }
 0x1a3   : > { %v1300_v2 = vmax.f32 %v1294_v62, 0.0  ;;  %2040 = vmatprep.subr.bf16.mxu0 %v2405_v23 }
 0x1a4   : > { %v1298_v4 = vmax.f32 %v1286_v0, 0.0 }
 0x1a5   : > { %v1302_v5 = vpack.c.bf16 %v1300_v2, %v1299_v1 }
 0x1a6   : > { %v1301_v6 = vpack.c.bf16 %v1298_v4, %v1297_v3  ;;  %2041 = vmatpush3.bf16.msra.mxu0 %v2405_v23  ;;  %v2052_v7 = vpop.f32.mrb[24].mxu1 }
 0x1a7   : > { %v1440_v8 = vadd.f32 %v2052_v7, %v2452_v38  ;;  %v1431_v9 = vpop.f32.mrb[25].mxu1  ;;  %2054 = vmatprep.subr.bf16.mxu0 %v2400_v22 }
 0x1a8   : > { %v1432_v10 = vadd.f32 %v1431_v9, %v2454_v40  ;;  %2042 = vmatprep.mubr.msk.bf16.mxu0 %vm381_vm0, %v1301_v6  ;;  %v2053_v11 = vpop.f32.mrb[26].mxu1 }
 0x1a9   : > { %v1443_v12 = vadd.f32 %v2053_v11, %v2456_v42  ;;  %2043 = vmatmul.mubr.msk.bf16.vlgmr.msra.gmra.mrb[24].mxu0 %vm381_vm0, %v1302_v5  ;;  %v1434_v13 = vpop.f32.mrb[27].mxu1  ;;  %v1448_v15 = vmax.f32 %v1440_v8, 0.0 }
 0x1aa   : > { %v1435_v14 = vadd.f32 %v1434_v13, %v2459_v46  ;;  %2055 = vmatpush3.bf16.msra.mxu0 %v2400_v22  ;;  %v1446_v17 = vmax.f32 %v1432_v10, 0.0 }
 0x1ab   : > { %v1449_v16 = vmax.f32 %v1443_v12, 0.0  ;;  %2056 = vmatprep.subr.bf16.mxu0 %v2405_v23 }
 0x1ac   : > { %v1447_v18 = vmax.f32 %v1435_v14, 0.0 }
 0x1ad   : > { %v1451_v19 = vpack.c.bf16 %v1449_v16, %v1448_v15 }
 0x1ae   : > { %v1450_v20 = vpack.c.bf16 %v1447_v18, %v1446_v17  ;;  %2057 = vmatpush3.bf16.msra.mxu0 %v2405_v23  ;;  %v2068_v21 = vpop.f32.mrb[28].mxu1 }
 0x1af   : > { %v1589_v24 = vadd.f32 %v2068_v21, %v2452_v38  ;;  %v1580_v25 = vpop.f32.mrb[29].mxu1  ;;  %2070 = vmatprep.subr.bf16.mxu0 %v2400_v22 }
 0x1b0   : > { %v1581_v26 = vadd.f32 %v1580_v25, %v2454_v40  ;;  %2058 = vmatprep.mubr.msk.bf16.mxu0 %vm381_vm0, %v1450_v20  ;;  %v2069_v27 = vpop.f32.mrb[30].mxu1 }
 0x1b1   : > { %v1592_v28 = vadd.f32 %v2069_v27, %v2456_v42  ;;  %2059 = vmatmul.mubr.msk.bf16.vlgmr.msra.gmra.mrb[28].mxu0 %vm381_vm0, %v1451_v19  ;;  %v1583_v29 = vpop.f32.mrb[31].mxu1  ;;  %v1597_v31 = vmax.f32 %v1589_v24, 0.0  ;;  %v2538_v42 = vld [vmem:[%s2751_s6] ss:$0 sm:$0xff] }
 0x1b2   : > { %v1584_v30 = vadd.f32 %v1583_v29, %v2459_v46  ;;  %2071 = vmatpush3.bf16.msra.mxu0 %v2400_v22  ;;  %v1595_v38 = vmax.f32 %v1581_v26, 0.0 }
 0x1b3   : > { %v1598_v32 = vmax.f32 %v1592_v28, 0.0  ;;  %2072 = vmatprep.subr.bf16.mxu0 %v2405_v23 }
 0x1b4   : > { %v1596_v33 = vmax.f32 %v1584_v30, 0.0 }
 0x1b5   : > { %v1600_v34 = vpack.c.bf16 %v1598_v32, %v1597_v31 }
 0x1b6   : > { %v1599_v40 = vpack.c.bf16 %v1596_v33, %v1595_v38  ;;  %2073 = vmatpush3.bf16.msra.mxu0 %v2405_v23 }
 0x1b8   : > { %2074 = vmatprep.mubr.msk.bf16.mxu0 %vm381_vm0, %v1599_v40 }
 0x1b9   : > { %2075 = vmatmul.mubr.msk.bf16.vlgmr.msra.gmra.mrb[32].mxu0 %vm381_vm0, %v1600_v34 }
 0x1f0   : > { %v1964_v22 = vpop.f32.mrb[4].mxu0 }
 0x1f1   : > { %v595_v46 = vadd.f32 %v1964_v22, %v2538_v42  ;;  %v586_v35 = vpop.f32.mrb[5].mxu0 }
 0x1f2   : > { %v587_v36 = vadd.f32 %v2538_v42, %v586_v35  ;;  %v1965_v37 = vpop.f32.mrb[6].mxu0 }
 0x1f3   : > { %v603_v39 = vmax.f32 %v595_v46, 0.0  ;;  %v598_v41 = vadd.f32 %v1965_v37, %v2538_v42  ;;  %v589_v23 = vpop.f32.mrb[7].mxu0 }
 0x1f4   : > { %v601_v44 = vmax.f32 %v587_v36, 0.0  ;;  %v590_v45 = vadd.f32 %v2538_v42, %v589_v23 }
 0x1f5   : > { %v604_v47 = vmax.f32 %v598_v41, 0.0  ;;  %v613_v48 = vmul.f32 %v2546_v43, %v603_v39 }
 0x1f6   : > { %v602_v49 = vmax.f32 %v590_v45, 0.0  ;;  %v611_v50 = vmul.f32 %v2546_v43, %v601_v44 }
 0x1f7   : > { %v614_v51 = vmul.f32 %v2546_v43, %v604_v47  ;;  %v621_v52 = vsel %vm381_vm0, %v613_v48, 0.0 }
 0x1f8   : > { %v615_v53 = vsel %vm381_vm0, %v611_v50, 0.0  ;;  %622 = vadd.xlane.f32.xlu1 %v621_v52  ;;  %v612_v55 = vmul.f32 %v2546_v43, %v602_v49 }
 0x1f9   : > { %616 = vadd.xlane.f32.xlu0 %v615_v53  ;;  %v624_v54 = vsel %vm381_vm0, %v614_v51, 0.0 }
 0x1fa   : > { %v618_v56 = vsel %vm381_vm0, %v612_v55, 0.0 }
 0x1fd   : > { %625 = vadd.xlane.f32.xlu0 %v624_v54 }
 0x201   : > { %619 = vadd.xlane.f32.xlu0 %v618_v56 }
 0x25c   : > { %v1980_v57 = vpop.f32.mrb[8].mxu0 }
 0x25d   : > { %v752_v58 = vadd.f32 %v1980_v57, %v2538_v42  ;;  %v743_v59 = vpop.f32.mrb[9].mxu0 }
 0x25e   : > { %v744_v60 = vadd.f32 %v2538_v42, %v743_v59  ;;  %v1981_v61 = vpop.f32.mrb[10].mxu0 }
 0x25f   : > { %v760_v62 = vmax.f32 %v752_v58, 0.0  ;;  %v755_v63 = vadd.f32 %v1981_v61, %v2538_v42  ;;  %v746_v0 = vpop.f32.mrb[11].mxu0 }
 0x260   : > { %v758_v1 = vmax.f32 %v744_v60, 0.0  ;;  %v747_v2 = vadd.f32 %v2538_v42, %v746_v0 }
 0x261   : > { %v761_v3 = vmax.f32 %v755_v63, 0.0  ;;  %v764_v4 = vmul.f32 %v2546_v43, %v760_v62 }
 0x262   : > { %v759_v5 = vmax.f32 %v747_v2, 0.0  ;;  %v762_v6 = vmul.f32 %v2546_v43, %v758_v1 }
 0x263   : > { %v772_v7 = vsel %vm381_vm0, %v764_v4, 0.0  ;;  %v765_v11 = vmul.f32 %v2546_v43, %v761_v3 }
 0x264   : > { %v1996_v8 = vpop.f32.mrb[12].mxu0  ;;  %773 = vadd.xlane.f32.xlu0 %v772_v7  ;;  %v766_v9 = vsel %vm381_vm0, %v762_v6, 0.0  ;;  %v763_v10 = vmul.f32 %v2546_v43, %v759_v5 }
 0x265   : > { %v901_v12 = vadd.f32 %v1996_v8, %v2538_v42  ;;  %v892_v13 = vpop.f32.mrb[13].mxu0  ;;  %767 = vadd.xlane.f32.xlu1 %v766_v9  ;;  %v775_v24 = vsel %vm381_vm0, %v765_v11, 0.0 }
 0x266   : > { %v893_v14 = vadd.f32 %v2538_v42, %v892_v13  ;;  %v1997_v15 = vpop.f32.mrb[14].mxu0  ;;  %v769_v16 = vsel %vm381_vm0, %v763_v10, 0.0 }
 0x267   : > { %v909_v17 = vmax.f32 %v901_v12, 0.0  ;;  %v904_v18 = vadd.f32 %v1997_v15, %v2538_v42  ;;  %v895_v19 = vpop.f32.mrb[15].mxu0 }
 0x268   : > { %v907_v20 = vmax.f32 %v893_v14, 0.0  ;;  %v896_v21 = vadd.f32 %v2538_v42, %v895_v19  ;;  %770 = vadd.xlane.f32.xlu0 %v769_v16 }
 0x269   : > { %776 = vadd.xlane.f32.xlu1 %v775_v24  ;;  %v913_v25 = vmul.f32 %v2546_v43, %v909_v17  ;;  %v910_v27 = vmax.f32 %v904_v18, 0.0 }
 0x26a   : > { %v908_v26 = vmax.f32 %v896_v21, 0.0  ;;  %v911_v31 = vmul.f32 %v2546_v43, %v907_v20 }
 0x26b   : > { %v921_v28 = vsel %vm381_vm0, %v913_v25, 0.0  ;;  %v914_v35 = vmul.f32 %v2546_v43, %v910_v27 }
 0x26c   : > { %v2012_v29 = vpop.f32.mrb[16].mxu0  ;;  %v912_v30 = vmul.f32 %v2546_v43, %v908_v26  ;;  %v915_v41 = vsel %vm381_vm0, %v911_v31, 0.0 }
 0x26d   : > { %v1050_v32 = vadd.f32 %v2012_v29, %v2538_v42  ;;  %v1041_v38 = vpop.f32.mrb[17].mxu0  ;;  %922 = vadd.xlane.f32.xlu1 %v921_v28  ;;  %v924_v49 = vsel %vm381_vm0, %v914_v35, 0.0 }
 0x26e   : > { %v1042_v33 = vadd.f32 %v2538_v42, %v1041_v38  ;;  %v2013_v34 = vpop.f32.mrb[18].mxu0  ;;  %v918_v40 = vsel %vm381_vm0, %v912_v30, 0.0 }
 0x26f   : > { %v1058_v22 = vmax.f32 %v1050_v32, 0.0  ;;  %v1044_v46 = vpop.f32.mrb[19].mxu0  ;;  %919 = vadd.xlane.f32.xlu0 %v918_v40  ;;  %v1053_v37 = vadd.f32 %v2013_v34, %v2538_v42 }
 0x270   : > { %v1056_v36 = vmax.f32 %v1042_v33, 0.0  ;;  %v1045_v39 = vadd.f32 %v2538_v42, %v1044_v46 }
 0x271   : > { %916 = vadd.xlane.f32.xlu1 %v915_v41  ;;  %v1062_v45 = vmul.f32 %v2546_v43, %v1058_v22  ;;  %v1059_v47 = vmax.f32 %v1053_v37, 0.0 }
 0x272   : > { %v1057_v23 = vmax.f32 %v1045_v39, 0.0  ;;  %v1060_v44 = vmul.f32 %v2546_v43, %v1056_v36 }
 0x273   : > { %v1070_v59 = vsel %vm381_vm0, %v1062_v45, 0.0  ;;  %v1063_v63 = vmul.f32 %v2546_v43, %v1059_v47 }
 0x274   : > { %v2028_v48 = vpop.f32.mrb[20].mxu0  ;;  %v1064_v50 = vsel %vm381_vm0, %v1060_v44, 0.0  ;;  %v1061_v51 = vmul.f32 %v2546_v43, %v1057_v23 }
 0x275   : > { %v1201_v52 = vadd.f32 %v2028_v48, %v2538_v42  ;;  %v1192_v53 = vpop.f32.mrb[21].mxu0  ;;  %925 = vadd.xlane.f32.xlu1 %v924_v49  ;;  %1065 = vadd.xlane.f32.xlu0 %v1064_v50  ;;  %v1073_v5 = vsel %vm381_vm0, %v1063_v63, 0.0 }
 0x276   : > { %v1193_v54 = vadd.f32 %v2538_v42, %v1192_v53  ;;  %v2029_v55 = vpop.f32.mrb[22].mxu0  ;;  %v1067_v62 = vsel %vm381_vm0, %v1061_v51, 0.0 }
 0x277   : > { %v1209_v56 = vmax.f32 %v1201_v52, 0.0  ;;  %v1204_v57 = vadd.f32 %v2029_v55, %v2538_v42  ;;  %v1195_v58 = vpop.f32.mrb[23].mxu0 }
 0x278   : > { %v1207_v60 = vmax.f32 %v1193_v54, 0.0  ;;  %v1196_v61 = vadd.f32 %v2538_v42, %v1195_v58 }
 0x279   : > { %1071 = vadd.xlane.f32.xlu1 %v1070_v59  ;;  %1068 = vadd.xlane.f32.xlu0 %v1067_v62  ;;  %v1210_v2 = vmax.f32 %v1204_v57, 0.0  ;;  %v1213_v3 = vmul.f32 %v2546_v43, %v1209_v56 }
 0x27a   : > { %v1208_v0 = vmax.f32 %v1196_v61, 0.0  ;;  %v1211_v1 = vmul.f32 %v2546_v43, %v1207_v60 }
 0x27b   : > { %v1221_v14 = vsel %vm381_vm0, %v1213_v3, 0.0  ;;  %v1214_v15 = vmul.f32 %v2546_v43, %v1210_v2 }
 0x27c   : > { %v2044_v4 = vpop.f32.mrb[24].mxu0  ;;  %v1215_v6 = vsel %vm381_vm0, %v1211_v1, 0.0  ;;  %v1212_v7 = vmul.f32 %v2546_v43, %v1208_v0 }
 0x27d   : > { %v1352_v8 = vadd.f32 %v2044_v4, %v2538_v42  ;;  %v1343_v9 = vpop.f32.mrb[25].mxu0  ;;  %1074 = vadd.xlane.f32.xlu1 %v1073_v5  ;;  %1216 = vadd.xlane.f32.xlu0 %v1215_v6  ;;  %v1224_v27 = vsel %vm381_vm0, %v1214_v15, 0.0 }
 0x27e   : > { %v1344_v10 = vadd.f32 %v2538_v42, %v1343_v9  ;;  %v2045_v11 = vpop.f32.mrb[26].mxu0  ;;  %v1218_v19 = vsel %vm381_vm0, %v1212_v7, 0.0 }
 0x27f   : > { %v1360_v12 = vmax.f32 %v1352_v8, 0.0  ;;  %v1346_v13 = vpop.f32.mrb[27].mxu0  ;;  %v1355_v17 = vadd.f32 %v2045_v11, %v2538_v42 }
 0x280   : > { %v1358_v16 = vmax.f32 %v1344_v10, 0.0  ;;  %v1347_v18 = vadd.f32 %v2538_v42, %v1346_v13 }
 0x281   : > { %1222 = vadd.xlane.f32.xlu1 %v1221_v14  ;;  %1219 = vadd.xlane.f32.xlu0 %v1218_v19  ;;  %v1364_v24 = vmul.f32 %v2546_v43, %v1360_v12  ;;  %v1361_v25 = vmax.f32 %v1355_v17, 0.0 }
 0x282   : > { %v1359_v20 = vmax.f32 %v1347_v18, 0.0  ;;  %v1362_v21 = vmul.f32 %v2546_v43, %v1358_v16 }
 0x283   : > { %v1372_v22 = vsel %vm381_vm0, %v1364_v24, 0.0  ;;  %v1365_v37 = vmul.f32 %v2546_v43, %v1361_v25 }
 0x284   : > { %v2060_v26 = vpop.f32.mrb[28].mxu0  ;;  %v1366_v28 = vsel %vm381_vm0, %v1362_v21, 0.0  ;;  %v1363_v29 = vmul.f32 %v2546_v43, %v1359_v20 }
 0x285   : > { %v1501_v30 = vadd.f32 %v2060_v26, %v2538_v42  ;;  %v1492_v31 = vpop.f32.mrb[29].mxu0  ;;  %1225 = vadd.xlane.f32.xlu1 %v1224_v27  ;;  %1367 = vadd.xlane.f32.xlu0 %v1366_v28  ;;  %v1375_v47 = vsel %vm381_vm0, %v1365_v37, 0.0  ;;  %v623_v10 = vpop.xlane.xlu1 %622  ;;  %v438_v26 = vlaneseq }
 0x286   : > { %v1493_v32 = vadd.f32 %v2538_v42, %v1492_v31  ;;  %v2061_v38 = vpop.f32.mrb[30].mxu0  ;;  %v1369_v36 = vsel %vm381_vm0, %v1363_v29, 0.0  ;;  %v617_v8 = vpop.xlane.xlu0 %616 }
 0x287   : > { %v1509_v33 = vmax.f32 %v1501_v30, 0.0  ;;  %v1504_v34 = vadd.f32 %v2061_v38, %v2538_v42  ;;  %v1495_v40 = vpop.f32.mrb[31].mxu0  ;;  %v2641_v29 = vand.u32 127, %v438_v26 }
 0x288   : > { %v1507_v46 = vmax.f32 %v1493_v32, 0.0  ;;  %v1496_v35 = vadd.f32 %v2538_v42, %v1495_v40 }
 0x289   : > { %1373 = vadd.xlane.f32.xlu1 %v1372_v22  ;;  %1370 = vadd.xlane.f32.xlu0 %v1369_v36  ;;  %v1510_v23 = vmax.f32 %v1504_v34, 0.0  ;;  %v1513_v44 = vmul.f32 %v2546_v43, %v1509_v33  ;;  %vm778_vm1 = vcmp.eq.s32.totalorder %v2641_v29, 1  ;;  %vm627_vm2 = vcmp.eq.s32.totalorder %v2641_v29, 0 }
 0x28a   : > { %v1508_v39 = vmax.f32 %v1496_v35, 0.0  ;;  %v1511_v41 = vmul.f32 %v2546_v43, %v1507_v46  ;;  %v626_v9 = vpop.xlane.xlu0 %625  ;;  %vm927_vm3 = vcmp.eq.s32.totalorder %v2641_v29, 2  ;;  %vm1076_vm4 = vcmp.eq.s32.totalorder %v2641_v29, 3 }
 0x28b   : > { %v1521_v55 = vsel %vm381_vm0, %v1513_v44, 0.0  ;;  %v1514_v57 = vmul.f32 %v2546_v43, %v1510_v23  ;;  %v628_v34 = vsel %vm627_vm2, %v617_v8, 0.0  ;;  %vm1227_vm5 = vcmp.eq.s32.totalorder %v2641_v29, 4 }
 0x28c   : > { %v2076_v45 = vpop.f32.mrb[32].mxu0  ;;  %v1515_v48 = vsel %vm381_vm0, %v1511_v41, 0.0  ;;  %v1512_v49 = vmul.f32 %v2546_v43, %v1508_v39  ;;  %v631_v37 = vsel %vm627_vm2, %v626_v9, 0.0  ;;  %v630_v39 = vsel %vm627_vm2, %v623_v10, 0.0 }
 0x28d   : > { %v1650_v50 = vadd.f32 %v2076_v45, %v2538_v42  ;;  %v1641_v51 = vpop.f32.mrb[33].mxu0  ;;  %1376 = vadd.xlane.f32.xlu1 %v1375_v47  ;;  %1516 = vadd.xlane.f32.xlu0 %v1515_v48  ;;  %v1524_v0 = vsel %vm381_vm0, %v1514_v57, 0.0  ;;  %vm1378_vm6 = vcmp.eq.s32.totalorder %v2641_v29, 5  ;;  %vm1527_vm7 = vcmp.eq.s32.totalorder %v2641_v29, 6 }
 0x28e   : > { %v1642_v52 = vadd.f32 %v2538_v42, %v1641_v51  ;;  %v2077_v53 = vpop.f32.mrb[34].mxu0  ;;  %v1518_v56 = vsel %vm381_vm0, %v1512_v49, 0.0  ;;  %v620_v11 = vpop.xlane.xlu0 %619  ;;  %vm1676_vm8 = vcmp.eq.s32.totalorder %v2641_v29, 7 }
 0x28f   : > { %v1644_v54 = vpop.f32.mrb[35].mxu0  ;;  %v1658_v58 = vmax.f32 %v1650_v50, 0.0  ;;  %v1653_v60 = vadd.f32 %v2077_v53, %v2538_v42  ;;  %v629_v45 = vsel %vm627_vm2, %v620_v11, 0.0 }
 0x290   : > { %v1656_v59 = vmax.f32 %v1642_v52, 0.0  ;;  %v1645_v61 = vadd.f32 %v2538_v42, %v1644_v54 }
 0x291   : > { %1522 = vadd.xlane.f32.xlu1 %v1521_v55  ;;  %1519 = vadd.xlane.f32.xlu0 %v1518_v56  ;;  %v1659_v1 = vmax.f32 %v1653_v60, 0.0  ;;  %v1662_v3 = vmul.f32 %v2546_v43, %v1658_v58 }
 0x292   : > { %v1657_v62 = vmax.f32 %v1645_v61, 0.0  ;;  %v1660_v63 = vmul.f32 %v2546_v43, %v1656_v59 }
 0x293   : > { %v1670_v5 = vsel %vm381_vm0, %v1662_v3, 0.0  ;;  %v1663_v6 = vmul.f32 %v2546_v43, %v1659_v1 }
 0x294   : > { %v1664_v2 = vsel %vm381_vm0, %v1660_v63, 0.0  ;;  %v1661_v4 = vmul.f32 %v2546_v43, %v1657_v62 }
 0x295   : > { %1525 = vadd.xlane.f32.xlu1 %v1524_v0  ;;  %1665 = vadd.xlane.f32.xlu0 %v1664_v2  ;;  %v1673_v7 = vsel %vm381_vm0, %v1663_v6, 0.0 }
 0x296   : > { %v1667_v42 = vsel %vm381_vm0, %v1661_v4, 0.0 }
 0x299   : > { %1671 = vadd.xlane.f32.xlu1 %v1670_v5  ;;  %1668 = vadd.xlane.f32.xlu0 %v1667_v42 }
 0x29d   : > { %1674 = vadd.xlane.f32.xlu0 %v1673_v7 }
 0x2f1   : > { %v774_v13 = vpop.xlane.xlu0 %773 }
 0x2f2   : > { %v768_v12 = vpop.xlane.xlu1 %767  ;;  %v781_v46 = vsel %vm778_vm1, %v774_v13, 0.0 }
 0x2f3   : > { %v779_v32 = vsel %vm778_vm1, %v768_v12, 0.0  ;;  %v785_v50 = vadd.f32 %v781_v46, %v630_v39 }
 0x2f4   : > { %v783_v22 = vadd.f32 %v779_v32, %v628_v34 }
 0x2f5   : > { %v771_v15 = vpop.xlane.xlu0 %770 }
 0x2f6   : > { %v777_v14 = vpop.xlane.xlu1 %776  ;;  %v780_v35 = vsel %vm778_vm1, %v771_v15, 0.0 }
 0x2f7   : > { %v784_v51 = vadd.f32 %v780_v35, %v629_v45  ;;  %v782_v53 = vsel %vm778_vm1, %v777_v14, 0.0 }
 0x2f8   : > { %v786_v2 = vadd.f32 %v782_v53, %v631_v37 }
 0x2fa   : > { %v923_v16 = vpop.xlane.xlu1 %922 }
 0x2fb   : > { %v930_v47 = vsel %vm927_vm3, %v923_v16, 0.0 }
 0x2fc   : > { %v920_v17 = vpop.xlane.xlu0 %919  ;;  %v934_v57 = vadd.f32 %v930_v47, %v785_v50 }
 0x2fd   : > { %v929_v48 = vsel %vm927_vm3, %v920_v17, 0.0 }
 0x2fe   : > { %v917_v18 = vpop.xlane.xlu1 %916  ;;  %v933_v58 = vadd.f32 %v929_v48, %v784_v51 }
 0x2ff   : > { %v928_v40 = vsel %vm927_vm3, %v917_v18, 0.0 }
 0x300   : > { %v932_v41 = vadd.f32 %v928_v40, %v783_v22 }
 0x302   : > { %v926_v19 = vpop.xlane.xlu1 %925  ;;  %v1066_v20 = vpop.xlane.xlu0 %1065 }
 0x303   : > { %v1077_v36 = vsel %vm1076_vm4, %v1066_v20, 0.0  ;;  %v931_v62 = vsel %vm927_vm3, %v926_v19, 0.0 }
 0x304   : > { %v1081_v52 = vadd.f32 %v1077_v36, %v932_v41  ;;  %v935_v8 = vadd.f32 %v931_v62, %v786_v2 }
 0x306   : > { %v1072_v21 = vpop.xlane.xlu1 %1071  ;;  %v1069_v43 = vpop.xlane.xlu0 %1068 }
 0x307   : > { %v1079_v54 = vsel %vm1076_vm4, %v1072_v21, 0.0  ;;  %v1078_v55 = vsel %vm1076_vm4, %v1069_v43, 0.0 }
 0x308   : > { %v1083_v3 = vadd.f32 %v1079_v54, %v934_v57  ;;  %v1082_v4 = vadd.f32 %v1078_v55, %v933_v58 }
 0x30a   : > { %v1075_v24 = vpop.xlane.xlu1 %1074  ;;  %v1217_v25 = vpop.xlane.xlu0 %1216 }
 0x30b   : > { %v1228_v49 = vsel %vm1227_vm5, %v1217_v25, 0.0  ;;  %v1080_v42 = vsel %vm1076_vm4, %v1075_v24, 0.0 }
 0x30c   : > { %v1232_v59 = vadd.f32 %v1228_v49, %v1081_v52  ;;  %v1084_v18 = vadd.f32 %v1080_v42, %v935_v8 }
 0x30e   : > { %v1223_v27 = vpop.xlane.xlu1 %1222  ;;  %v1220_v28 = vpop.xlane.xlu0 %1219 }
 0x30f   : > { %v1230_v63 = vsel %vm1227_vm5, %v1223_v27, 0.0  ;;  %v1229_v0 = vsel %vm1227_vm5, %v1220_v28, 0.0 }
 0x310   : > { %v1234_v9 = vadd.f32 %v1230_v63, %v1083_v3  ;;  %v1233_v10 = vadd.f32 %v1229_v0, %v1082_v4 }
 0x312   : > { %v1226_v30 = vpop.xlane.xlu1 %1225  ;;  %v1368_v31 = vpop.xlane.xlu0 %1367 }
 0x313   : > { %v1379_v56 = vsel %vm1378_vm6, %v1368_v31, 0.0  ;;  %v1231_v14 = vsel %vm1227_vm5, %v1226_v30, 0.0 }
 0x314   : > { %v1383_v5 = vadd.f32 %v1379_v56, %v1232_v59  ;;  %v1235_v24 = vadd.f32 %v1231_v14, %v1084_v18 }
 0x316   : > { %v1374_v38 = vpop.xlane.xlu1 %1373  ;;  %v1371_v33 = vpop.xlane.xlu0 %1370 }
 0x317   : > { %v1381_v6 = vsel %vm1378_vm6, %v1374_v38, 0.0  ;;  %v1380_v7 = vsel %vm1378_vm6, %v1371_v33, 0.0 }
 0x318   : > { %v1385_v19 = vadd.f32 %v1381_v6, %v1234_v9  ;;  %v1384_v20 = vadd.f32 %v1380_v7, %v1233_v10 }
 0x31a   : > { %v1377_v23 = vpop.xlane.xlu1 %1376  ;;  %v1517_v44 = vpop.xlane.xlu0 %1516 }
 0x31b   : > { %v1528_v1 = vsel %vm1527_vm7, %v1517_v44, 0.0  ;;  %v1382_v43 = vsel %vm1378_vm6, %v1377_v23, 0.0 }
 0x31c   : > { %v1532_v11 = vadd.f32 %v1528_v1, %v1383_v5  ;;  %v1386_v33 = vadd.f32 %v1382_v43, %v1235_v24 }
 0x31e   : > { %v1523_v60 = vpop.xlane.xlu1 %1522  ;;  %v1520_v61 = vpop.xlane.xlu0 %1519 }
 0x31f   : > { %v1530_v15 = vsel %vm1527_vm7, %v1523_v60, 0.0  ;;  %v1529_v16 = vsel %vm1527_vm7, %v1520_v61, 0.0 }
 0x320   : > { %v1534_v25 = vadd.f32 %v1530_v15, %v1385_v19  ;;  %v1533_v26 = vadd.f32 %v1529_v16, %v1384_v20 }
 0x322   : > { %v1526_v12 = vpop.xlane.xlu1 %1525  ;;  %v1666_v13 = vpop.xlane.xlu0 %1665 }
 0x323   : > { %v1677_v17 = vsel %vm1676_vm8, %v1666_v13, 0.0  ;;  %v1531_v31 = vsel %vm1527_vm7, %v1526_v12, 0.0 }
 0x324   : > { %v1681_v21 = vadd.f32 %v1677_v17, %v1532_v11  ;;  %v1535_v22 = vadd.f32 %v1531_v31, %v1386_v33 }
 0x326   : > { %v1672_v27 = vpop.xlane.xlu1 %1671  ;;  %v1669_v28 = vpop.xlane.xlu0 %1668  ;;  %v1686_v30 = vsel %vm1685_vm9, %v1681_v21, -inf }
 0x327   : > { %v1679_v32 = vsel %vm1676_vm8, %v1672_v27, 0.0  ;;  %v1678_v38 = vsel %vm1676_vm8, %v1669_v28, 0.0  ;;  %1687 = vmax.xlane.f32.xlu1 %v1686_v30 }
 0x328   : > { %v1683_v34 = vadd.f32 %v1679_v32, %v1534_v25  ;;  %v1682_v40 = vadd.f32 %v1678_v38, %v1533_v26 }
 0x32a   : > { %v1675_v46 = vpop.xlane.xlu0 %1674  ;;  %v1692_v35 = vsel %vm1685_vm9, %v1683_v34, -inf  ;;  %v1689_v36 = vsel %vm1685_vm9, %v1682_v40, -inf }
 0x32b   : > { %v1680_v37 = vsel %vm1676_vm8, %v1675_v46, 0.0  ;;  %1693 = vmax.xlane.f32.xlu1 %v1692_v35  ;;  %1690 = vmax.xlane.f32.xlu0 %v1689_v36 }
 0x32c   : > { %v1684_v39 = vadd.f32 %v1680_v37, %v1535_v22 }
 0x32e   : > { %v1695_v41 = vsel %vm1685_vm9, %v1684_v39, -inf }
 0x32f   : > { %1696 = vmax.xlane.f32.xlu0 %v1695_v41 }
 0x3b4   : > { %v1688_v23 = vpop.xlane.xlu1 %1687 }
 0x3b5   : > { %v1698_v44 = vsub.f32 %v1681_v21, %v1688_v23 }
 0x3b7   : > { %v1702_v45 = vmul.f32 1.442695, %v1698_v44 }
 0x3b8   : > { %v1694_v47 = vpop.xlane.xlu1 %1693  ;;  %v1691_v48 = vpop.xlane.xlu0 %1690 }
 0x3b9   : > { %2128 = vpow2.f32 %v1702_v45  ;;  %v1700_v49 = vsub.f32 %v1683_v34, %v1694_v47  ;;  %v1699_v50 = vsub.f32 %v1682_v40, %v1691_v48 }
 0x3bb   : > { %v1706_v51 = vmul.f32 1.442695, %v1700_v49  ;;  %v1704_v52 = vmul.f32 1.442695, %v1699_v50 }
 0x3bc   : > { %v1697_v53 = vpop.xlane.xlu0 %1696 }
 0x3bd   : > { %2130 = vpow2.f32 %v1706_v51  ;;  %v1701_v29 = vsub.f32 %v1684_v39, %v1697_v53 }
 0x3be   : > { %2132 = vpow2.f32 %v1704_v52 }
 0x3bf   : > { %v1708_v54 = vmul.f32 1.442695, %v1701_v29 }
 0x3c1   : > { %2134 = vpow2.f32 %v1708_v54 }
 0x3c3   : > { %v2129_v55 = vpop.eup %2128 }
 0x3c4   : > { %v1710_v56 = vsel %vm1685_vm9, %v2129_v55, 0.0 }
 0x3c5   : > { %1711 = vadd.xlane.f32.xlu1 %v1710_v56 }
 0x3c7   : > { %v2131_v57 = vpop.eup %2130 }
 0x3c8   : > { %v2133_v58 = vpop.eup %2132  ;;  %v1716_v59 = vsel %vm1685_vm9, %v2131_v57, 0.0 }
 0x3c9   : > { %1717 = vadd.xlane.f32.xlu1 %v1716_v59  ;;  %v1713_v60 = vsel %vm1685_vm9, %v2133_v58, 0.0 }
 0x3ca   : > { %1714 = vadd.xlane.f32.xlu0 %v1713_v60 }
 0x3cb   : > { %v2135_v61 = vpop.eup %2134 }
 0x3cc   : > { %v1719_v62 = vsel %vm1685_vm9, %v2135_v61, 0.0 }
 0x3ce   : > { %1720 = vadd.xlane.f32.xlu0 %v1719_v62 }
 0x452   : > { %v1712_v63 = vpop.xlane.xlu1 %1711 }
 0x453   : > { %2136 = vrcp.f32 %v1712_v63 }
 0x456   : > { %v1718_v0 = vpop.xlane.xlu1 %1717 }
 0x457   : > { %2138 = vrcp.f32 %v1718_v0  ;;  %v1715_v1 = vpop.xlane.xlu0 %1714 }
 0x458   : > { %2140 = vrcp.f32 %v1715_v1 }
 0x45b   : > { %v1721_v2 = vpop.xlane.xlu0 %1720 }
 0x45c   : > { %2142 = vrcp.f32 %v1721_v2 }
 0x45d   : > { %v2137_v3 = vpop.eup %2136 }
 0x45e   : > { %v1726_v4 = vmul.f32 %v2137_v3, %v2129_v55 }
 0x460   : > { %1730 = vst.msk [vmem:[%s349_s21] sm:$0xff] %vm1685_vm9, %v1726_v4 }
 0x461   : > { %v2139_v5 = vpop.eup %2138 }
 0x462   : > { %v2141_v42 = vpop.eup %2140  ;;  %v1728_v6 = vmul.f32 %v2139_v5, %v2131_v57 }
 0x463   : > { %v1727_v7 = vmul.f32 %v2141_v42, %v2133_v58 }
 0x464   : > { %1732 = vst.msk [vmem:[%s349_s21 + $0x10] sm:$0xff] %vm1685_vm9, %v1728_v6 }
 0x465   : > { %1731 = vst.msk [vmem:[%s349_s21 + $0x8] sm:$0xff] %vm1685_vm9, %v1727_v7 }
 0x466   : > { %v2143_v8 = vpop.eup %2142 }
 0x467   : > { %v1729_v9 = vmul.f32 %v2143_v8, %v2135_v61 }
 0x469   : > { %1733 = vst.msk [vmem:[%s349_s21 + $0x18] sm:$0xff] %vm1685_vm9, %v1729_v9 }
 0x46a PF: > { %p18_p7 = scmp.ge.s32.totalorder %s2281_s10, 4   ;;  %s2757_s27 = smov %s2200_s28 }
 0x46b   : > { %s2758_s28 = smov %s2204_s29  ;;  %s2759_s29 = smov %s2291_s13 }
 0x46c   : > { %s2760_s30 = smov %s2281_s10  ;;  %20 = sbr.rel (!%p18_p7) target bundleno = 3 (0x3), region = 95 }
 0x473   :  { %1756 = vsyncpa [#allocation3], 1 }
 0x474   :  { %1758 = vsyncpa [#allocation3 + $0x1], 1 }

</bundles_post_ra>
